<compile_context>
chip_gen: v6e
topology: v6e:2x2x1
jax: 0.10.0
libtpu: 0.0.40
codegen_flags: <defaults>
</compile_context>

<pallas_src>
import functools

import jax
import jax.numpy as jnp
from jax.experimental import pallas as pl
from jax.experimental.pallas import tpu as pltpu

TILE_MAX = 2048                    # voxel-tile (lane) width per grid step; multiple of 128
VMEM_LIMIT = 32 * 1024 * 1024      # explicit scoped-VMEM cap; safe on v5e/v6e/v7x


def _round_up(x, m):
    return ((x + m - 1) // m) * m


# ----------------------------- kernels ------------------------------------ #

def fused_forward_kernel(x_ref, wu_ref, bu_ref, wh_ref, bh_ref,
                         feat_ref, heat_ref):
    """Per voxel tile (voxels on lanes):
         features[64, T]  = relu(w_u[64,1] * x[1,T] + b_u[64,1])       (VPU)
         heat[L8, T]      = sigmoid(w_h[L8,64] @ features + b_h[L8,1]) (MXU)
    Both outputs are written channel-major => lane-dense stores."""
    x_row = x_ref[...]                                                 # [1, T]
    feats = jnp.maximum(wu_ref[...] * x_row + bu_ref[...], 0.0)        # [64, T]
    feat_ref[...] = feats
    logits = jnp.dot(wh_ref[...], feats,
                     preferred_element_type=jnp.float32) + bh_ref[...]  # [L8, T]
    heat_ref[...] = jax.nn.sigmoid(logits)


def normalize_kernel(heat_ref, inv_ref, o_ref):
    """global_heatmap[l, :] = heatmap[l, :] * (1 / heatmap_sum[l])."""
    o_ref[...] = heat_ref[...] * inv_ref[...]


# ----------------------------- wrappers ------------------------------------ #

def fused_forward(x_row, w_u, b_u, w_h, b_h, tile):
    _, n_pad = x_row.shape
    c_feat = w_u.shape[0]
    l8 = w_h.shape[0]
    return pl.pallas_call(
        fused_forward_kernel,
        out_shape=(jax.ShapeDtypeStruct((c_feat, n_pad), jnp.float32),
                   jax.ShapeDtypeStruct((l8, n_pad), jnp.float32)),
        grid_spec=pltpu.PrefetchScalarGridSpec(
            num_scalar_prefetch=0,
            grid=(n_pad // tile,),
            in_specs=[pl.BlockSpec((1, tile), lambda i: (0, i)),
                      pl.BlockSpec((c_feat, 1), lambda i: (0, 0)),
                      pl.BlockSpec((c_feat, 1), lambda i: (0, 0)),
                      pl.BlockSpec((l8, c_feat), lambda i: (0, 0)),
                      pl.BlockSpec((l8, 1), lambda i: (0, 0))],
            out_specs=[pl.BlockSpec((c_feat, tile), lambda i: (0, i)),
                       pl.BlockSpec((l8, tile), lambda i: (0, i))]),
        compiler_params=pltpu.CompilerParams(
            dimension_semantics=("parallel",),
            vmem_limit_bytes=VMEM_LIMIT),
    )(x_row, w_u, b_u, w_h, b_h)


def normalize(heat, inv_sums, tile):
    l8, n_pad = heat.shape
    return pl.pallas_call(
        normalize_kernel,
        out_shape=jax.ShapeDtypeStruct((l8, n_pad), jnp.float32),
        grid_spec=pltpu.PrefetchScalarGridSpec(
            num_scalar_prefetch=0,
            grid=(n_pad // tile,),
            in_specs=[pl.BlockSpec((l8, tile), lambda i: (0, i)),
                      pl.BlockSpec((l8, 1), lambda i: (0, 0))],
            out_specs=pl.BlockSpec((l8, tile), lambda i: (0, i))),
        input_output_aliases={0: 0},   # normalize heat in place, no new HBM alloc
        compiler_params=pltpu.CompilerParams(
            dimension_semantics=("parallel",),
            vmem_limit_bytes=VMEM_LIMIT),
    )(heat, inv_sums)


# ----------------------------- full forward -------------------------------- #

def make_params(key, landmark_num):
    k1, k2, k3, k4 = jax.random.split(key, 4)
    l8 = max(8, _round_up(landmark_num, 8))
    # Stand-in U_Net3D(1, 64): 1x1x1 conv, stored channel-major as (64, 1).
    w_u = 0.1 * jax.random.normal(k1, (64, 1), jnp.float32)
    b_u = 0.1 * jax.random.normal(k2, (64, 1), jnp.float32)
    # Conv3d(64, landmarkNum, 1, 1, 0): weight stored transposed (L8, 64),
    # landmarks padded only to a sublane multiple of 8 (not 128 lanes).
    w_h = jnp.zeros((l8, 64), jnp.float32).at[:landmark_num, :].set(
        0.1 * jax.random.normal(k3, (landmark_num, 64), jnp.float32))
    b_h = jnp.zeros((l8, 1), jnp.float32).at[:landmark_num, :].set(
        0.1 * jax.random.normal(k4, (landmark_num, 1), jnp.float32))
    return dict(w_u=w_u, b_u=b_u, w_h=w_h, b_h=b_h)


def _pick_tile(n):
    return min(TILE_MAX, _round_up(n, 128))


@functools.partial(jax.jit, static_argnums=(2,))
def coarse_net_forward(x, params, landmark_num):
    """x: (1, 1, D, H, W) float32 (PyTorch NCDHW).  Returns
    (global_heatmap [L, D, H, W], global_features [1, 64, D, H, W])."""
    _, _, d, h, w = x.shape
    n = d * h * w
    tile = _pick_tile(n)
    n_pad = _round_up(n, tile)

    x_row = x.reshape(1, n)                       # voxels on lanes; no transpose
    if n_pad != n:
        x_row = jnp.pad(x_row, ((0, 0), (0, n_pad - n)))

    feats_t, heat_t = fused_forward(x_row, params["w_u"], params["b_u"],
                                    params["w_h"], params["b_h"], tile)

    # Tiny cross-tile reduction + reciprocal in XLA so the fused pass keeps
    # "parallel" grid semantics (v7x megacore); padded columns excluded.
    sums = jnp.sum(heat_t[:, :n], axis=-1, keepdims=True)           # [L8, 1]
    inv_sums = 1.0 / sums

    norm_t = normalize(heat_t, inv_sums, tile)                       # [L8, n_pad]

    global_heatmap = norm_t[:landmark_num, :n].reshape(landmark_num, d, h, w)
    global_features = feats_t[:, :n].reshape(1, 64, d, h, w)
    # TODO(synk): optionally cast global_features to bf16 at the store if the
    # downstream SA-LSTM consumer tolerates it (halves the dominant HBM stream).
    return global_heatmap, global_features


def coarse_net_reference(x, params, landmark_num):
    """Pure-JAX reference replicating the same math for validation."""
    _, _, d, h, w = x.shape
    n = d * h * w
    xr = x.reshape(1, n)
    gf = jnp.maximum(params["w_u"] * xr + params["b_u"], 0.0)             # [64, N]
    logits = params["w_h"][:landmark_num] @ gf + params["b_h"][:landmark_num]
    heat = jax.nn.sigmoid(logits)                                         # [L, N]
    sums = jnp.sum(heat, axis=-1, keepdims=True)
    hm = (heat / sums).reshape(landmark_num, d, h, w)
    return hm, gf.reshape(1, 64, d, h, w)


if __name__ == "__main__":
    LANDMARKS = 4
    key = jax.random.PRNGKey(0)
    kx, kp, kx2 = jax.random.split(key, 3)
    params = make_params(kp, LANDMARKS)

    # Primary test: N = 16^3 = 4096 voxels -> two 2048-wide grid steps.
    D = H = W = 16
    x = jax.random.normal(kx, (1, 1, D, H, W), jnp.float32)
    heatmap, features = coarse_net_forward(x, params, LANDMARKS)
    heatmap = jax.block_until_ready(heatmap)
    features = jax.block_until_ready(features)
    hm_ref, gf_ref = coarse_net_reference(x, params, LANDMARKS)
    assert heatmap.shape == (LANDMARKS, D, H, W)
    assert features.shape == (1, 64, D, H, W)
    assert jnp.allclose(heatmap, hm_ref, rtol=1e-4, atol=1e-6)
    assert jnp.allclose(features, gf_ref, rtol=1e-4, atol=1e-5)

    # Ragged test: N = 6*10*14 = 840 (not a multiple of 128) exercises the
    # pad-to-tile + slice-back path.
    D2, H2, W2 = 6, 10, 14
    x2 = jax.random.normal(kx2, (1, 1, D2, H2, W2), jnp.float32)
    hm2, gf2 = coarse_net_forward(x2, params, LANDMARKS)
    hm2 = jax.block_until_ready(hm2)
    gf2 = jax.block_until_ready(gf2)
    hm2_ref, gf2_ref = coarse_net_reference(x2, params, LANDMARKS)
    assert hm2.shape == (LANDMARKS, D2, H2, W2)
    assert gf2.shape == (1, 64, D2, H2, W2)
    assert jnp.allclose(hm2, hm2_ref, rtol=1e-4, atol=1e-6)
    assert jnp.allclose(gf2, gf2_ref, rtol=1e-4, atol=1e-5)

    print("KERNEL_OK")
</pallas_src>

<mosaic_0001>
module attributes {stable_mosaic.version = 11 : i64} {
  func.func @fused_forward_kernel(%arg0: i32, %arg1: memref<1x2048xf32, #tpu.memory_space<vmem>>, %arg2: memref<64x1xf32, #tpu.memory_space<vmem>>, %arg3: memref<64x1xf32, #tpu.memory_space<vmem>>, %arg4: memref<8x64xf32, #tpu.memory_space<vmem>>, %arg5: memref<8x1xf32, #tpu.memory_space<vmem>>, %arg6: memref<64x2048xf32, #tpu.memory_space<vmem>>, %arg7: memref<8x2048xf32, #tpu.memory_space<vmem>>) attributes {dimension_semantics = [#tpu.dimension_semantics<parallel>], iteration_bounds = array<i64: 2>, scalar_prefetch = 0 : i64, scratch_operands = 0 : i64, tpu.core_type = #tpu.core_type<tc>, window_params = [{transform_indices = @transform_0, window_bounds = array<i64: 1, 2048>}, {pipeline_mode = #tpu.pipeline_mode<synchronous>, transform_indices = @transform_1, window_bounds = array<i64: 64, 1>}, {pipeline_mode = #tpu.pipeline_mode<synchronous>, transform_indices = @transform_2, window_bounds = array<i64: 64, 1>}, {pipeline_mode = #tpu.pipeline_mode<synchronous>, transform_indices = @transform_3, window_bounds = array<i64: 8, 64>}, {pipeline_mode = #tpu.pipeline_mode<synchronous>, transform_indices = @transform_4, window_bounds = array<i64: 8, 1>}, {transform_indices = @transform_5, window_bounds = array<i64: 64, 2048>}, {transform_indices = @transform_6, window_bounds = array<i64: 8, 2048>}]} {
    %c0 = arith.constant 0 : index
    %c0_0 = arith.constant 0 : index
    %0 = vector.load %arg1[%c0, %c0_0] : memref<1x2048xf32, #tpu.memory_space<vmem>>, vector<1x2048xf32>
    %c0_1 = arith.constant 0 : index
    %c0_2 = arith.constant 0 : index
    %1 = vector.load %arg2[%c0_1, %c0_2] : memref<64x1xf32, #tpu.memory_space<vmem>>, vector<64x1xf32>
    %2 = vector.broadcast %1 : vector<64x1xf32> to vector<64x2048xf32>
    %3 = vector.broadcast %0 : vector<1x2048xf32> to vector<64x2048xf32>
    %4 = arith.mulf %2, %3 : vector<64x2048xf32>
    %c0_3 = arith.constant 0 : index
    %c0_4 = arith.constant 0 : index
    %5 = vector.load %arg3[%c0_3, %c0_4] : memref<64x1xf32, #tpu.memory_space<vmem>>, vector<64x1xf32>
    %6 = vector.broadcast %5 : vector<64x1xf32> to vector<64x2048xf32>
    %7 = arith.addf %4, %6 : vector<64x2048xf32>
    %cst = arith.constant 0.000000e+00 : f32
    %8 = vector.broadcast %cst : f32 to vector<64x2048xf32>
    %9 = arith.maximumf %7, %8 : vector<64x2048xf32>
    %c0_5 = arith.constant 0 : index
    %c0_6 = arith.constant 0 : index
    %10 = vector.load %arg6[%c0_5, %c0_6] : memref<64x2048xf32, #tpu.memory_space<vmem>>, vector<64x2048xf32>
    tpu.vector_store %arg6[%c0_5, %c0_6], %9 {strides = array<i32>} : memref<64x2048xf32, #tpu.memory_space<vmem>>, vector<64x2048xf32>,
    %c0_7 = arith.constant 0 : index
    %c0_8 = arith.constant 0 : index
    %11 = vector.load %arg4[%c0_7, %c0_8] : memref<8x64xf32, #tpu.memory_space<vmem>>, vector<8x64xf32>
    %cst_9 = arith.constant dense<0.000000e+00> : vector<8x2048xf32>
    %12 = tpu.matmul %11, %9, %cst_9 {dimension_numbers = #tpu.dot_dimension_numbers<[1], [0], [0], [1], [0, 0, 1, 1], [], []>} : vector<8x64xf32>, vector<64x2048xf32>, vector<8x2048xf32> -> vector<8x2048xf32>
    %c0_10 = arith.constant 0 : index
    %c0_11 = arith.constant 0 : index
    %13 = vector.load %arg5[%c0_10, %c0_11] : memref<8x1xf32, #tpu.memory_space<vmem>>, vector<8x1xf32>
    %14 = vector.broadcast %13 : vector<8x1xf32> to vector<8x2048xf32>
    %15 = arith.addf %12, %14 : vector<8x2048xf32>
    %16 = arith.negf %15 : vector<8x2048xf32>
    %17 = math.exp %16 : vector<8x2048xf32>
    %cst_12 = arith.constant 1.000000e+00 : f32
    %18 = vector.broadcast %cst_12 : f32 to vector<8x2048xf32>
    %19 = arith.addf %18, %17 : vector<8x2048xf32>
    %20 = arith.divf %18, %19 : vector<8x2048xf32>
    %c0_13 = arith.constant 0 : index
    %c0_14 = arith.constant 0 : index
    %21 = vector.load %arg7[%c0_13, %c0_14] : memref<8x2048xf32, #tpu.memory_space<vmem>>, vector<8x2048xf32>
    tpu.vector_store %arg7[%c0_13, %c0_14], %20 {strides = array<i32>} : memref<8x2048xf32, #tpu.memory_space<vmem>>, vector<8x2048xf32>,
    return
  }
  func.func @transform_0(%arg0: i32) -> (i32, i32) {
    %c0_i32 = arith.constant 0 : i32
    %c0_i32_0 = arith.constant 0 : i32
    return %c0_i32, %arg0 : i32, i32
  }
  func.func @transform_1(%arg0: i32) -> (i32, i32) {
    %c0_i32 = arith.constant 0 : i32
    %c0_i32_0 = arith.constant 0 : i32
    %c0_i32_1 = arith.constant 0 : i32
    return %c0_i32, %c0_i32_0 : i32, i32
  }
  func.func @transform_2(%arg0: i32) -> (i32, i32) {
    %c0_i32 = arith.constant 0 : i32
    %c0_i32_0 = arith.constant 0 : i32
    %c0_i32_1 = arith.constant 0 : i32
    return %c0_i32, %c0_i32_0 : i32, i32
  }
  func.func @transform_3(%arg0: i32) -> (i32, i32) {
    %c0_i32 = arith.constant 0 : i32
    %c0_i32_0 = arith.constant 0 : i32
    %c0_i32_1 = arith.constant 0 : i32
    return %c0_i32, %c0_i32_0 : i32, i32
  }
  func.func @transform_4(%arg0: i32) -> (i32, i32) {
    %c0_i32 = arith.constant 0 : i32
    %c0_i32_0 = arith.constant 0 : i32
    %c0_i32_1 = arith.constant 0 : i32
    return %c0_i32, %c0_i32_0 : i32, i32
  }
  func.func @transform_5(%arg0: i32) -> (i32, i32) {
    %c0_i32 = arith.constant 0 : i32
    %c0_i32_0 = arith.constant 0 : i32
    return %c0_i32, %arg0 : i32, i32
  }
  func.func @transform_6(%arg0: i32) -> (i32, i32) {
    %c0_i32 = arith.constant 0 : i32
    %c0_i32_0 = arith.constant 0 : i32
    return %c0_i32, %arg0 : i32, i32
  }
}

module attributes {stable_mosaic.version = 11 : i64} {
  func.func @normalize_kernel(%arg0: i32, %arg1: memref<8x2048xf32, #tpu.memory_space<vmem>>, %arg2: memref<8x1xf32, #tpu.memory_space<vmem>>, %arg3: memref<8x2048xf32, #tpu.memory_space<vmem>>) attributes {dimension_semantics = [#tpu.dimension_semantics<parallel>], iteration_bounds = array<i64: 2>, scalar_prefetch = 0 : i64, scratch_operands = 0 : i64, tpu.core_type = #tpu.core_type<tc>, window_params = [{transform_indices = @transform_0, window_bounds = array<i64: 8, 2048>}, {pipeline_mode = #tpu.pipeline_mode<synchronous>, transform_indices = @transform_1, window_bounds = array<i64: 8, 1>}, {transform_indices = @transform_2, window_bounds = array<i64: 8, 2048>}]} {
    %c0 = arith.constant 0 : index
    %c0_0 = arith.constant 0 : index
    %0 = vector.load %arg1[%c0, %c0_0] : memref<8x2048xf32, #tpu.memory_space<vmem>>, vector<8x2048xf32>
    %c0_1 = arith.constant 0 : index
    %c0_2 = arith.constant 0 : index
    %1 = vector.load %arg2[%c0_1, %c0_2] : memref<8x1xf32, #tpu.memory_space<vmem>>, vector<8x1xf32>
    %2 = vector.broadcast %1 : vector<8x1xf32> to vector<8x2048xf32>
    %3 = arith.mulf %0, %2 : vector<8x2048xf32>
    %c0_3 = arith.constant 0 : index
    %c0_4 = arith.constant 0 : index
    %4 = vector.load %arg3[%c0_3, %c0_4] : memref<8x2048xf32, #tpu.memory_space<vmem>>, vector<8x2048xf32>
    tpu.vector_store %arg3[%c0_3, %c0_4], %3 {strides = array<i32>} : memref<8x2048xf32, #tpu.memory_space<vmem>>, vector<8x2048xf32>,
    return
  }
  func.func @transform_0(%arg0: i32) -> (i32, i32) {
    %c0_i32 = arith.constant 0 : i32
    %c0_i32_0 = arith.constant 0 : i32
    return %c0_i32, %arg0 : i32, i32
  }
  func.func @transform_1(%arg0: i32) -> (i32, i32) {
    %c0_i32 = arith.constant 0 : i32
    %c0_i32_0 = arith.constant 0 : i32
    %c0_i32_1 = arith.constant 0 : i32
    return %c0_i32, %c0_i32_0 : i32, i32
  }
  func.func @transform_2(%arg0: i32) -> (i32, i32) {
    %c0_i32 = arith.constant 0 : i32
    %c0_i32_0 = arith.constant 0 : i32
    return %c0_i32, %arg0 : i32, i32
  }
}

</mosaic_0001>

<bundles_post_ra>
// kernel: coarse_net_forward.3
= control target key start
LH: loop header
LB: loop body
LE: loop exit
PB: predicated region body
PF: predicated region fallthrough
CT: control target
= control target key end

     0   :  { %s302_s9 = smov 0   ;;  %s340_s0 = inlined_call_operand.vmem [shape: f32[8,4096], index: 0, kind: input, shape index: {}, may-alias: {0,2}]   ;;  %s341_s1 = inlined_call_operand.vmem [shape: f32[8,1], index: 1, kind: input, shape index: {}]   ;;  %s342_s2 = inlined_call_operand.vmem [shape: f32[8,4096], index: 2, kind: output, shape index: {}, may-alias: {0,2}]  }
   0x1 LB: > { %s257_s10 = sadd.s32 4294967295, %s284_s9   ;;  %p261_p0 = scmp.ge.s32.totalorder %s284_s9, 1  ;;  %s284_s9 = sphi %s302_s9, %s12_s9  }
   0x2   : > { %p113_p1 = scmp.lt.s32.totalorder %s284_s9, 3 }
   0x4   : > { %p114_p2 = pnand %p261_p0, %p113_p1 }
   0x5   : > { %s262_s13 = sshll.u32 (!%p114_p2), %s257_s10, 4 }
   0x6   : > { %117 = sbr.rel (%p114_p2) target bundleno = 148 (0x94), region = 28  ;;  %p136_p3 = scmp.lt.s32.totalorder (!%p114_p2), %s262_s13, 31 }
   0xb   : > { %v163_v0 = vld [vmem:[%s341_s1] sm:$0xff]  ;;  %v286_v1 = vmov 0   ;;  %s344_s13 = smov (!%p136_p3, %s262_s13), 31 }
   0xc   : > { %277 = vset.pattern.permute.xlu0 %v286_v1  ;;  %s263_s14 = sshll.u32 %s344_s13, 3 }
   0xd   : > { %166 = vperm.xlu0 %277, %v163_v0   ;;  %s139_s17 = scalar_lea.vmem %s340_s0, %s263_s14  ;;  %s319_s20 = scalar_lea.vmem %s342_s2, %s263_s14 }
   0xe   : > { %v147_v2 = vld [vmem:[%s139_s17] sm:$0xff]  ;;  %v148_v3 = vld [vmem:[%s139_s17 + $0x8] sm:$0xff]  ;;  %v149_v4 = vld [vmem:[%s139_s17 + $0x10] sm:$0xff] }
   0xf   : > { %v150_v5 = vld [vmem:[%s139_s17 + $0x18] sm:$0xff]  ;;  %v151_v6 = vld [vmem:[%s139_s17 + $0x20] sm:$0xff]  ;;  %v152_v7 = vld [vmem:[%s139_s17 + $0x28] sm:$0xff] }
  0x10   : > { %v153_v8 = vld [vmem:[%s139_s17 + $0x30] sm:$0xff]  ;;  %v154_v9 = vld [vmem:[%s139_s17 + $0x38] sm:$0xff]  ;;  %v155_v10 = vld [vmem:[%s139_s17 + $0x40] sm:$0xff] }
  0x11   : > { %v156_v11 = vld [vmem:[%s139_s17 + $0x48] sm:$0xff]  ;;  %v157_v13 = vld [vmem:[%s139_s17 + $0x50] sm:$0xff]  ;;  %v158_v14 = vld [vmem:[%s139_s17 + $0x58] sm:$0xff] }
  0x12   : > { %v159_v15 = vld [vmem:[%s139_s17 + $0x60] sm:$0xff]  ;;  %v160_v16 = vld [vmem:[%s139_s17 + $0x68] sm:$0xff]  ;;  %v161_v17 = vld [vmem:[%s139_s17 + $0x70] sm:$0xff] }
  0x13   : > { %v162_v18 = vld [vmem:[%s139_s17 + $0x78] sm:$0xff] }
  0x88   : > { %v167_v12 = vpop.permute.xlu0 %166 }
  0x89   : > { %v169_v19 = vmul.f32 %v167_v12, %v147_v2  ;;  %v170_v20 = vmul.f32 %v167_v12, %v148_v3  ;;  %v171_v21 = vmul.f32 %v167_v12, %v149_v4  ;;  %v172_v22 = vmul.f32 %v167_v12, %v150_v5 }
  0x8a   : > { %v173_v23 = vmul.f32 %v167_v12, %v151_v6  ;;  %v174_v24 = vmul.f32 %v167_v12, %v152_v7  ;;  %v175_v25 = vmul.f32 %v167_v12, %v153_v8  ;;  %v176_v26 = vmul.f32 %v167_v12, %v154_v9 }
  0x8b   : > { %v177_v27 = vmul.f32 %v167_v12, %v155_v10  ;;  %v178_v28 = vmul.f32 %v167_v12, %v156_v11  ;;  %v179_v29 = vmul.f32 %v167_v12, %v157_v13  ;;  %v180_v30 = vmul.f32 %v167_v12, %v158_v14  ;;  %185 = vst [vmem:[%s319_s20] sm:$0xff] %v169_v19 }
  0x8c   : > { %186 = vst [vmem:[%s319_s20 + $0x8] sm:$0xff] %v170_v20  ;;  %187 = vst [vmem:[%s319_s20 + $0x10] sm:$0xff] %v171_v21  ;;  %v181_v31 = vmul.f32 %v167_v12, %v159_v15  ;;  %v182_v32 = vmul.f32 %v167_v12, %v160_v16  ;;  %v183_v33 = vmul.f32 %v167_v12, %v161_v17 }
  0x8d   : > { %188 = vst [vmem:[%s319_s20 + $0x18] sm:$0xff] %v172_v22  ;;  %v184_v34 = vmul.f32 %v167_v12, %v162_v18  ;;  %189 = vst [vmem:[%s319_s20 + $0x20] sm:$0xff] %v173_v23 }
  0x8e   : > { %190 = vst [vmem:[%s319_s20 + $0x28] sm:$0xff] %v174_v24  ;;  %191 = vst [vmem:[%s319_s20 + $0x30] sm:$0xff] %v175_v25 }
  0x8f   : > { %192 = vst [vmem:[%s319_s20 + $0x38] sm:$0xff] %v176_v26  ;;  %193 = vst [vmem:[%s319_s20 + $0x40] sm:$0xff] %v177_v27 }
  0x90   : > { %194 = vst [vmem:[%s319_s20 + $0x48] sm:$0xff] %v178_v28  ;;  %195 = vst [vmem:[%s319_s20 + $0x50] sm:$0xff] %v179_v29 }
  0x91   : > { %196 = vst [vmem:[%s319_s20 + $0x58] sm:$0xff] %v180_v30  ;;  %197 = vst [vmem:[%s319_s20 + $0x60] sm:$0xff] %v181_v31 }
  0x92   : > { %198 = vst [vmem:[%s319_s20 + $0x68] sm:$0xff] %v182_v32  ;;  %199 = vst [vmem:[%s319_s20 + $0x70] sm:$0xff] %v183_v33 }
  0x93   : > { %200 = vst [vmem:[%s319_s20 + $0x78] sm:$0xff] %v184_v34 }
  0x94 PF: > { %s12_s9 = sadd.s32 1, %s284_s9  }
  0x95   : > { %p9_p4 = scmp.ge.s32.totalorder %s12_s9, 4  }
  0x97   :  { %11 = sbr.rel (!%p9_p4) target bundleno = 1 (0x1), region = 58 }

// kernel: coarse_net_forward.2
= control target key start
LH: loop header
LB: loop body
LE: loop exit
PB: predicated region body
PF: predicated region fallthrough
CT: control target
= control target key end

     0   :  { %12 = vsyncpa [#allocation3], 0  ;;  %s2266_s21 = smov 0   ;;  %s2268_s22 = smov 0   ;;  %s3359_s0 = inlined_call_operand.vmem [shape: f32[1,4096], index: 0, kind: input, shape index: {}]   ;;  %s3360_s1 = inlined_call_operand.vmem [shape: f32[64,1], index: 1, kind: input, shape index: {}]   ;;  %s3361_s2 = inlined_call_operand.vmem [shape: f32[64,1], index: 2, kind: input, shape index: {}]   ;;  %s3362_s3 = inlined_call_operand.hbm [shape: f32[8,64], index: 3, kind: input, shape index: {}]   ;;  %s3363_s4 = inlined_call_operand.vmem [shape: f32[8,1], index: 4, kind: input, shape index: {}]   ;;  %s3364_s5 = inlined_call_operand.vmem [shape: f32[64,4096], index: 5, kind: output, shape index: {0}]   ;;  %s3365_s6 = inlined_call_operand.vmem [shape: f32[8,4096], index: 6, kind: output, shape index: {1}]  }
   0x1   :  { %s2270_s23 = smov 0  }
   0x2 LB: > { %s2279_s24 = sadd.s32 4294967295, %s2226_s23   ;;  %s2281_s25 = sadd.s32 1, %s2226_s23   ;;  %s2226_s23 = sphi %s2270_s23, %s3375_s23   ;;  %s2222_s22 = sphi %s2268_s22, %s3374_s22   ;;  %s2218_s21 = sphi %s2266_s21, %s3373_s21  }
   0x3   : > { %s132_s26 = ssub.s32 %s2226_s23, %s2281_s25  ;;  %s135_s27 = sadd.s32 1, %s2222_s22 }
   0x4   : > { %p133_p0 = scmp.eq.s32.totalorder %s132_s26, 0  ;;  %p145_p1 = scmp.ne.s32.totalorder %s2222_s22, %s2218_s21 }
   0x5   : > { %p146_p2 = scmp.eq.s32.totalorder %s2279_s24, 1  ;;  %p2032_p3 = scmp.ge.s32.totalorder %s2226_s23, 1 }
   0x6   : > { %s2289_s28 = scalar_select %p133_p0, %s2222_s22, %s135_s27  }
   0x7   : > { %p2291_p4 = por %p146_p2, %p145_p1  ;;  %p185_p5 = scmp.lt.s32.totalorder %s2226_s23, 3 }
   0x8   : > { %p2079_p6 = scmp.eq.s32.totalorder %s2279_s24, 0  ;;  %s2228_s7 = smov [#allocation2]  }
   0x9   : > { %p2296_p7 = pnand %p2032_p3, %p185_p5  ;;  %s204_s8 = sshll.u32 %s2228_s7, 4  ;;  %s205_s8 = int_to_ptr.vmem [resolvable:$true] %s204_s8 }
   0xa   : > { %s2185_s9 = scalar_lea.vmem %s205_s8, 128  ;;  %p2193_p0 = scmp.lt.s32.totalorder %s205_s8, %s205_s8 }
   0xb   : > { %p2075_p8 = pneg %p2296_p7  ;;  %p2186_p11 = scmp.ne.s32.totalorder %s205_s8, %s2185_s9 }
   0xc   : > { %p2194_p1 = scmp.lt.s32.totalorder %s2185_s9, %s2185_s9 }
   0xd   : > { %p2076_p9 = pnand %p2079_p6, %p2075_p8 }
   0xe   : > { %p2195_p2 = por %p2194_p1, %p2193_p0 }
   0xf   : > { %p2176_p10 = pneg %p2076_p9 }
  0x11   : > { %p2188_p12 = pnand %p2186_p11, %p2176_p10 }
  0x13   : > { %p2189_p13 = pneg %p2188_p12 }
  0x15   : > { %p2196_p3 = pnand %p2195_p2, %p2189_p13 }
  0x17   : > { %2199 = shalt.err (!%p2196_p3)
}
  0x18   : > { %2078 = dma.hbm_to_vmem [thread:$0]  (!%p2076_p9), %s3362_s3, 128, %s205_s8, [#allocation3]  }
  0x19   : > { %228 = sbr.rel (%p2296_p7) target bundleno = 503 (0x1f7), region = 40 }
  0x1e   : > { %2213 = dma.done.wait (%p2079_p6), [#allocation3], 128  }
  0x1f   : > { %2215 = vsyncadd (%p2079_p6), [#allocation3], 4294967168  ;;  %v2229_v0 = vmov 0   ;;  %v540_v1 = vld [vmem:[%s3361_s2 + $0x38] sm:$0xff]  ;;  %v281_v3 = vld [vmem:[%s3360_s1 + $0x30] sm:$0xff]  ;;  %v3366_v18 = vmov 0.0   ;;  %v325_v19 = vlaneseq }
  0x20   : > { %2109 = vset.pattern.permute.xlu1 %v2229_v0  ;;  %2108 = vset.pattern.permute.xlu0 %v2229_v0  ;;  %v282_v2 = vld [vmem:[%s3360_s1 + $0x38] sm:$0xff]  ;;  %v280_v4 = vld [vmem:[%s3360_s1 + $0x28] sm:$0xff]  ;;  %v539_v5 = vld [vmem:[%s3361_s2 + $0x30] sm:$0xff]  ;;  %s2038_s10 = sshll.u32 %s2279_s24, 4  ;;  %s251_s14 = sand.u32 1, %s2218_s21   ;;  %vm972_vm0 = vcmask 523264  }
  0x21   : > { %578 = vperm.xlu1 %2109, %v540_v1   ;;  %320 = vperm.xlu0 %2108, %v282_v2   ;;  %v279_v6 = vld [vmem:[%s3360_s1 + $0x20] sm:$0xff]  ;;  %v538_v7 = vld [vmem:[%s3361_s2 + $0x28] sm:$0xff]  ;;  %v278_v8 = vld [vmem:[%s3360_s1 + $0x18] sm:$0xff]  ;;  %p262_p5 = scmp.lt.s32.totalorder %s2038_s10, 31  ;;  %v326_v20 = vshrl.u32 %v325_v19, 7  ;;  %s2037_s21 = sshll.u32 %s251_s14, 10 }
  0x22   : > { %v537_v9 = vld [vmem:[%s3361_s2 + $0x20] sm:$0xff]  ;;  %v277_v10 = vld [vmem:[%s3360_s1 + $0x10] sm:$0xff]  ;;  %v536_v11 = vld [vmem:[%s3361_s2 + $0x18] sm:$0xff]  ;;  %1040 = vmatprep.mubr.f32.mxu0 %v3366_v18  ;;  %1111 = vmatprep.mubr.f32.mxu1 %v3366_v18  ;;  %s2454_s15 = scalar_lea.vmem [#allocation4], %s2037_s21  ;;  %s2070_s20 = sshll.u32 (%p2291_p4), %s2279_s24, 7 }
  0x23   : > { %v276_v12 = vld [vmem:[%s3360_s1 + $0x8] sm:$0xff]  ;;  %v535_v13 = vld [vmem:[%s3361_s2 + $0x10] sm:$0xff]  ;;  %v275_v14 = vld [vmem:[%s3360_s1] sm:$0xff]  ;;  %s3377_s10 = smov (!%p262_p5, %s2038_s10), 31  ;;  %v331_v21 = vsub.s32 1, %v326_v20  ;;  %v339_v22 = vsub.s32 3, %v326_v20  ;;  %s3094_s27 = scalar_lea.vmem (%p2291_p4), %s3364_s5, %s2070_s20 }
  0x24   : > { %v534_v15 = vld [vmem:[%s3361_s2 + $0x8] sm:$0xff]  ;;  %v533_v16 = vld [vmem:[%s3361_s2] sm:$0xff]  ;;  %s264_s13 = scalar_lea.vmem %s3359_s0, %s3377_s10  ;;  %v327_v23 = vsub.s32 0, %v326_v20  ;;  %v335_v24 = vsub.s32 2, %v326_v20  ;;  %v347_v26 = vsub.s32 5, %v326_v20  ;;  %v355_v27 = vsub.s32 7, %v326_v20 }
  0x25   : > { %315 = vperm.xlu0 %2108, %v281_v3   ;;  %310 = vperm.xlu1 %2109, %v280_v4   ;;  %v966_v17 = vld [vmem:[%s3363_s4] sm:$0xff]  ;;  %v343_v28 = vsub.s32 4, %v326_v20  ;;  %v351_v29 = vsub.s32 6, %v326_v20  ;;  %v274_v30 = vld [vmem:[%s264_s13 + $0x8] sm:$0xff]  ;;  %s2040_s16 = sshll.u32 %s3377_s10, 3 }
  0x26   : > { %v273_v25 = vld [vmem:[%s264_s13] sm:$0xff]  ;;  %v2390_v39 = vrot.slane %v274_v30, %v327_v23  ;;  %v2392_v40 = vrot.slane %v274_v30, %v335_v24  ;;  %v2394_v41 = vrot.slane %v274_v30, %v331_v21  ;;  %v2396_v42 = vrot.slane %v274_v30, %v339_v22  ;;  %s3059_s19 = scalar_lea.vmem %s3365_s6, %s2040_s16 }
  0x27   : > { %v2373_v31 = vrot.slane %v273_v25, %v331_v21  ;;  %v2375_v32 = vrot.slane %v273_v25, %v339_v22  ;;  %v2377_v33 = vrot.slane %v273_v25, %v327_v23  ;;  %v2379_v34 = vrot.slane %v273_v25, %v335_v24 }
  0x28   : > { %v2382_v35 = vrot.slane %v273_v25, %v347_v26  ;;  %v2384_v36 = vrot.slane %v273_v25, %v355_v27  ;;  %v2386_v37 = vrot.slane %v273_v25, %v343_v28  ;;  %v2388_v38 = vrot.slane %v273_v25, %v351_v29 }
  0x29   : > { %573 = vperm.xlu0 %2108, %v539_v5   ;;  %305 = vperm.xlu1 %2109, %v279_v6   ;;  %v2402_v45 = vrot.slane %v274_v30, %v347_v26  ;;  %v2404_v46 = vrot.slane %v274_v30, %v355_v27  ;;  %v2406_v47 = vrot.slane %v274_v30, %v343_v28 }
  0x2a   : > { %v2408_v48 = vrot.slane %v274_v30, %v351_v29 }
  0x2d   : > { %568 = vperm.xlu0 %2108, %v538_v7   ;;  %300 = vperm.xlu1 %2109, %v278_v8  }
  0x31   : > { %563 = vperm.xlu0 %2108, %v537_v9   ;;  %295 = vperm.xlu1 %2109, %v277_v10  }
  0x35   : > { %558 = vperm.xlu0 %2108, %v536_v11   ;;  %290 = vperm.xlu1 %2109, %v276_v12  }
  0x39   : > { %553 = vperm.xlu0 %2108, %v535_v13   ;;  %285 = vperm.xlu1 %2109, %v275_v14  }
  0x3d   : > { %548 = vperm.xlu0 %2108, %v534_v15   ;;  %543 = vperm.xlu1 %2109, %v533_v16  }
  0x41   : > { %969 = vperm.xlu0 %2108, %v966_v17  }
  0x9c   : > { %v2398_v43 = vpop.permute.xlu1 %578  ;;  %v2400_v44 = vpop.permute.xlu0 %320 }
  0x9d   : > { %v518_v49 = vmul.f32 %v2373_v31, %v2400_v44  ;;  %v520_v50 = vmul.f32 %v2375_v32, %v2400_v44  ;;  %v517_v51 = vmul.f32 %v2377_v33, %v2400_v44  ;;  %v519_v52 = vmul.f32 %v2379_v34, %v2400_v44 }
  0x9e   : > { %v522_v53 = vmul.f32 %v2382_v35, %v2400_v44  ;;  %v524_v54 = vmul.f32 %v2384_v36, %v2400_v44  ;;  %v521_v55 = vmul.f32 %v2386_v37, %v2400_v44  ;;  %v523_v56 = vmul.f32 %v2388_v38, %v2400_v44 }
  0x9f   : > { %v694_v57 = vadd.f32 %v2398_v43, %v518_v49  ;;  %v696_v58 = vadd.f32 %v2398_v43, %v520_v50  ;;  %v693_v59 = vadd.f32 %v2398_v43, %v517_v51  ;;  %v695_v60 = vadd.f32 %v2398_v43, %v519_v52 }
  0xa0   : > { %v2430_v61 = vpop.permute.xlu0 %315  ;;  %v2432_v62 = vpop.permute.xlu1 %310  ;;  %v2435_v63 = vadd.f32 %v2398_v43, %v522_v53  ;;  %v2438_v0 = vadd.f32 %v2398_v43, %v524_v54  ;;  %v2441_v1 = vadd.f32 %v2398_v43, %v521_v55  ;;  %v2444_v2 = vadd.f32 %v2398_v43, %v523_v56 }
  0xa1   : > { %v822_v3 = vmax.f32 %v694_v57, 0.0  ;;  %v824_v4 = vmax.f32 %v696_v58, 0.0  ;;  %v821_v5 = vmax.f32 %v693_v59, 0.0  ;;  %v823_v6 = vmax.f32 %v695_v60, 0.0 }
  0xa2   : > { %v502_v7 = vmul.f32 %v2373_v31, %v2430_v61  ;;  %v504_v8 = vmul.f32 %v2375_v32, %v2430_v61  ;;  %v501_v9 = vmul.f32 %v2377_v33, %v2430_v61  ;;  %v503_v10 = vmul.f32 %v2379_v34, %v2430_v61 }
  0xa3   : > { %950 = vst [vmem:[%s2454_s15 + $0x388] sm:$0xff] %v822_v3  ;;  %992 = vmatprep.subr.mxu0 %v822_v3  ;;  %952 = vst [vmem:[%s2454_s15 + $0x398] sm:$0xff] %v824_v4  ;;  %1063 = vmatprep.subr.mxu1 %v824_v4  ;;  %v486_v11 = vmul.f32 %v2373_v31, %v2432_v62  ;;  %v488_v12 = vmul.f32 %v2375_v32, %v2432_v62  ;;  %v826_v14 = vmax.f32 %v2435_v63, 0.0 }
  0xa4   : > { %949 = vst [vmem:[%s2454_s15 + $0x380] sm:$0xff] %v821_v5  ;;  %951 = vst [vmem:[%s2454_s15 + $0x390] sm:$0xff] %v823_v6  ;;  %v485_v13 = vmul.f32 %v2377_v33, %v2432_v62  ;;  %v2467_v15 = vpop.permute.xlu0 %573  ;;  %v2469_v16 = vpop.permute.xlu1 %305  ;;  %993 = vmatpush1.msra.mxu0 %v821_v5  ;;  %1064 = vmatpush1.msra.mxu1 %v823_v6  ;;  %v487_v17 = vmul.f32 %v2379_v34, %v2432_v62  ;;  %v828_v19 = vmax.f32 %v2438_v0, 0.0 }
  0xa5   : > { %v825_v20 = vmax.f32 %v2441_v1, 0.0  ;;  %v827_v21 = vmax.f32 %v2444_v2, 0.0  ;;  %v678_v22 = vadd.f32 %v2467_v15, %v502_v7  ;;  %v680_v23 = vadd.f32 %v2467_v15, %v504_v8  ;;  %954 = vst [vmem:[%s2454_s15 + $0x3a8] sm:$0xff] %v826_v14 }
  0xa6   : > { %v677_v24 = vadd.f32 %v2467_v15, %v501_v9  ;;  %v679_v25 = vadd.f32 %v2467_v15, %v503_v10  ;;  %v470_v26 = vmul.f32 %v2373_v31, %v2469_v16  ;;  %v472_v27 = vmul.f32 %v2375_v32, %v2469_v16  ;;  %956 = vst [vmem:[%s2454_s15 + $0x3b8] sm:$0xff] %v828_v19 }
  0xa7   : > { %v469_v28 = vmul.f32 %v2377_v33, %v2469_v16  ;;  %v471_v29 = vmul.f32 %v2379_v34, %v2469_v16  ;;  %953 = vst [vmem:[%s2454_s15 + $0x3a0] sm:$0xff] %v825_v20  ;;  %955 = vst [vmem:[%s2454_s15 + $0x3b0] sm:$0xff] %v827_v21  ;;  %v806_v30 = vmax.f32 %v678_v22, 0.0  ;;  %v808_v49 = vmax.f32 %v680_v23, 0.0 }
  0xa8   : > { %v805_v50 = vmax.f32 %v677_v24, 0.0  ;;  %v807_v51 = vmax.f32 %v679_v25, 0.0  ;;  %v2500_v52 = vpop.permute.xlu0 %568  ;;  %v2502_v53 = vpop.permute.xlu1 %300  ;;  %v506_v54 = vmul.f32 %v2382_v35, %v2430_v61  ;;  %v508_v55 = vmul.f32 %v2384_v36, %v2430_v61 }
  0xa9   : > { %v505_v56 = vmul.f32 %v2386_v37, %v2430_v61  ;;  %v2512_v57 = vmul.f32 %v2388_v38, %v2430_v61  ;;  %934 = vst [vmem:[%s2454_s15 + $0x308] sm:$0xff] %v806_v30  ;;  %994 = vmatprep.subr.mxu0 %v806_v30  ;;  %936 = vst [vmem:[%s2454_s15 + $0x318] sm:$0xff] %v808_v49  ;;  %1065 = vmatprep.subr.mxu1 %v808_v49 }
  0xaa   : > { %933 = vst [vmem:[%s2454_s15 + $0x300] sm:$0xff] %v805_v50  ;;  %935 = vst [vmem:[%s2454_s15 + $0x310] sm:$0xff] %v807_v51  ;;  %v662_v58 = vadd.f32 %v2500_v52, %v486_v11  ;;  %v664_v59 = vadd.f32 %v2500_v52, %v488_v12  ;;  %v661_v60 = vadd.f32 %v2500_v52, %v485_v13  ;;  %995 = vmatpush1.msra.mxu0 %v805_v50 }
  0xab   : > { %1066 = vmatpush1.msra.mxu1 %v807_v51  ;;  %v663_v3 = vadd.f32 %v2500_v52, %v487_v17  ;;  %v454_v4 = vmul.f32 %v2373_v31, %v2502_v53  ;;  %v456_v5 = vmul.f32 %v2375_v32, %v2502_v53  ;;  %v453_v9 = vmul.f32 %v2377_v33, %v2502_v53 }
  0xac   : > { %v790_v6 = vmax.f32 %v662_v58, 0.0  ;;  %v792_v7 = vmax.f32 %v664_v59, 0.0  ;;  %v789_v8 = vmax.f32 %v661_v60, 0.0  ;;  %v2528_v10 = vpop.permute.xlu0 %563  ;;  %v2530_v11 = vpop.permute.xlu1 %295  ;;  %v455_v13 = vmul.f32 %v2379_v34, %v2502_v53 }
  0xad   : > { %v791_v12 = vmax.f32 %v663_v3, 0.0  ;;  %v2535_v17 = vadd.f32 %v2467_v15, %v506_v54  ;;  %v2538_v22 = vadd.f32 %v2467_v15, %v508_v55  ;;  %v646_v23 = vadd.f32 %v2528_v10, %v470_v26 }
  0xae   : > { %918 = vst [vmem:[%s2454_s15 + $0x288] sm:$0xff] %v790_v6  ;;  %996 = vmatprep.subr.mxu0 %v790_v6  ;;  %920 = vst [vmem:[%s2454_s15 + $0x298] sm:$0xff] %v792_v7  ;;  %1067 = vmatprep.subr.mxu1 %v792_v7  ;;  %v648_v24 = vadd.f32 %v2528_v10, %v472_v27  ;;  %v645_v25 = vadd.f32 %v2528_v10, %v469_v28 }
  0xaf   : > { %917 = vst [vmem:[%s2454_s15 + $0x280] sm:$0xff] %v789_v8  ;;  %997 = vmatpush1.msra.mxu0 %v789_v8  ;;  %919 = vst [vmem:[%s2454_s15 + $0x290] sm:$0xff] %v791_v12  ;;  %1068 = vmatpush1.msra.mxu1 %v791_v12  ;;  %v647_v30 = vadd.f32 %v2528_v10, %v471_v29  ;;  %v438_v49 = vmul.f32 %v2373_v31, %v2530_v11  ;;  %v810_v26 = vmax.f32 %v2535_v17, 0.0 }
  0xb0   : > { %v440_v50 = vmul.f32 %v2375_v32, %v2530_v11  ;;  %v774_v27 = vmax.f32 %v646_v23, 0.0  ;;  %v776_v51 = vmax.f32 %v648_v24, 0.0  ;;  %v773_v28 = vmax.f32 %v645_v25, 0.0  ;;  %v2555_v55 = vpop.permute.xlu0 %558  ;;  %v2557_v29 = vpop.permute.xlu1 %290 }
  0xb1   : > { %v437_v54 = vmul.f32 %v2377_v33, %v2530_v11  ;;  %v775_v58 = vmax.f32 %v647_v30, 0.0  ;;  %v439_v59 = vmul.f32 %v2379_v34, %v2530_v11  ;;  %938 = vst [vmem:[%s2454_s15 + $0x328] sm:$0xff] %v810_v26  ;;  %v812_v60 = vmax.f32 %v2538_v22, 0.0 }
  0xb2   : > { %v2566_v3 = vadd.f32 %v2467_v15, %v505_v56  ;;  %902 = vst [vmem:[%s2454_s15 + $0x208] sm:$0xff] %v774_v27  ;;  %998 = vmatprep.subr.mxu0 %v774_v27  ;;  %904 = vst [vmem:[%s2454_s15 + $0x218] sm:$0xff] %v776_v51  ;;  %1069 = vmatprep.subr.mxu1 %v776_v51  ;;  %v630_v6 = vadd.f32 %v2555_v55, %v454_v4 }
  0xb3   : > { %901 = vst [vmem:[%s2454_s15 + $0x200] sm:$0xff] %v773_v28  ;;  %v632_v7 = vadd.f32 %v2555_v55, %v456_v5  ;;  %v629_v8 = vadd.f32 %v2555_v55, %v453_v9  ;;  %999 = vmatpush1.msra.mxu0 %v773_v28  ;;  %903 = vst [vmem:[%s2454_s15 + $0x210] sm:$0xff] %v775_v58  ;;  %1070 = vmatpush1.msra.mxu1 %v775_v58 }
  0xb4   : > { %v631_v12 = vadd.f32 %v2555_v55, %v455_v13  ;;  %v422_v56 = vmul.f32 %v2373_v31, %v2557_v29  ;;  %v424_v23 = vmul.f32 %v2375_v32, %v2557_v29  ;;  %940 = vst [vmem:[%s2454_s15 + $0x338] sm:$0xff] %v812_v60  ;;  %v809_v4 = vmax.f32 %v2566_v3, 0.0  ;;  %v2586_v25 = vpop.permute.xlu0 %553  ;;  %v2588_v30 = vpop.permute.xlu1 %285 }
  0xb5   : > { %v758_v5 = vmax.f32 %v630_v6, 0.0  ;;  %v760_v9 = vmax.f32 %v632_v7, 0.0  ;;  %v757_v24 = vmax.f32 %v629_v8, 0.0  ;;  %v421_v13 = vmul.f32 %v2377_v33, %v2557_v29 }
  0xb6   : > { %v759_v27 = vmax.f32 %v631_v12, 0.0  ;;  %v423_v51 = vmul.f32 %v2379_v34, %v2557_v29  ;;  %937 = vst [vmem:[%s2454_s15 + $0x320] sm:$0xff] %v809_v4  ;;  %v2597_v28 = vadd.f32 %v2467_v15, %v2512_v57  ;;  %v490_v58 = vmul.f32 %v2382_v35, %v2432_v62 }
  0xb7   : > { %886 = vst [vmem:[%s2454_s15 + $0x188] sm:$0xff] %v758_v5  ;;  %1000 = vmatprep.subr.mxu0 %v758_v5  ;;  %888 = vst [vmem:[%s2454_s15 + $0x198] sm:$0xff] %v760_v9  ;;  %1071 = vmatprep.subr.mxu1 %v760_v9  ;;  %v614_v6 = vadd.f32 %v2586_v25, %v438_v49  ;;  %v616_v7 = vadd.f32 %v2586_v25, %v440_v50 }
  0xb8   : > { %885 = vst [vmem:[%s2454_s15 + $0x180] sm:$0xff] %v757_v24  ;;  %v613_v8 = vadd.f32 %v2586_v25, %v437_v54  ;;  %1001 = vmatpush1.msra.mxu0 %v757_v24  ;;  %887 = vst [vmem:[%s2454_s15 + $0x190] sm:$0xff] %v759_v27  ;;  %1072 = vmatpush1.msra.mxu1 %v759_v27  ;;  %v615_v57 = vadd.f32 %v2586_v25, %v439_v59  ;;  %v3368_v49 = vmax.f32 %v2597_v28, 0.0  ;;  %v2616_v27 = vpop.permute.xlu0 %548  ;;  %v2618_v18 = vpop.permute.xlu1 %543 }
  0xb9   : > { %v406_v12 = vmul.f32 %v2373_v31, %v2588_v30  ;;  %v408_v5 = vmul.f32 %v2375_v32, %v2588_v30  ;;  %v742_v50 = vmax.f32 %v614_v6, 0.0  ;;  %v744_v9 = vmax.f32 %v616_v7, 0.0 }
  0xba   : > { %v741_v54 = vmax.f32 %v613_v8, 0.0  ;;  %v405_v24 = vmul.f32 %v2377_v33, %v2588_v30  ;;  %v743_v59 = vmax.f32 %v615_v57, 0.0  ;;  %v407_v31 = vmul.f32 %v2379_v34, %v2588_v30  ;;  %939 = vst [vmem:[%s2454_s15 + $0x330] sm:$0xff] %v3368_v49 }
  0xbb   : > { %v2626_v32 = vadd.f32 %v2500_v52, %v490_v58  ;;  %v492_v6 = vmul.f32 %v2384_v36, %v2432_v62  ;;  %870 = vst [vmem:[%s2454_s15 + $0x108] sm:$0xff] %v742_v50  ;;  %1002 = vmatprep.subr.mxu0 %v742_v50  ;;  %872 = vst [vmem:[%s2454_s15 + $0x118] sm:$0xff] %v744_v9  ;;  %1073 = vmatprep.subr.mxu1 %v744_v9 }
  0xbc   : > { %869 = vst [vmem:[%s2454_s15 + $0x100] sm:$0xff] %v741_v54  ;;  %v598_v33 = vadd.f32 %v2616_v27, %v422_v56  ;;  %v600_v7 = vadd.f32 %v2616_v27, %v424_v23  ;;  %v597_v34 = vadd.f32 %v2616_v27, %v421_v13  ;;  %1003 = vmatpush1.msra.mxu0 %v741_v54  ;;  %871 = vst [vmem:[%s2454_s15 + $0x110] sm:$0xff] %v743_v59 }
  0xbd   : > { %1074 = vmatpush1.msra.mxu1 %v743_v59  ;;  %v599_v58 = vadd.f32 %v2616_v27, %v423_v51  ;;  %v582_v8 = vadd.f32 %v2618_v18, %v406_v12  ;;  %v584_v57 = vadd.f32 %v2618_v18, %v408_v5  ;;  %v794_v56 = vmax.f32 %v2626_v32, 0.0 }
  0xbe   : > { %v726_v50 = vmax.f32 %v598_v33, 0.0  ;;  %v728_v23 = vmax.f32 %v600_v7, 0.0  ;;  %v725_v9 = vmax.f32 %v597_v34, 0.0  ;;  %v581_v13 = vadd.f32 %v2618_v18, %v405_v24  ;;  %v2659_v7 = vld [vmem:[#allocation2] sm:$0xff] }
  0xbf   : > { %v727_v54 = vmax.f32 %v599_v58, 0.0  ;;  %v710_v49 = vmax.f32 %v582_v8, 0.0  ;;  %v712_v59 = vmax.f32 %v584_v57, 0.0  ;;  %v583_v51 = vadd.f32 %v2618_v18, %v407_v31  ;;  %922 = vst [vmem:[%s2454_s15 + $0x2a8] sm:$0xff] %v794_v56 }
  0xc0   : > { %854 = vst [vmem:[%s2454_s15 + $0x88] sm:$0xff] %v726_v50  ;;  %1004 = vmatprep.subr.mxu0 %v726_v50  ;;  %856 = vst [vmem:[%s2454_s15 + $0x98] sm:$0xff] %v728_v23  ;;  %1075 = vmatprep.subr.mxu1 %v728_v23  ;;  %v709_v12 = vmax.f32 %v581_v13, 0.0  ;;  %v2650_v5 = vadd.f32 %v2500_v52, %v492_v6  ;;  %v489_v24 = vmul.f32 %v2386_v37, %v2432_v62 }
  0xc1   : > { %853 = vst [vmem:[%s2454_s15 + $0x80] sm:$0xff] %v725_v9  ;;  %v491_v33 = vmul.f32 %v2388_v38, %v2432_v62  ;;  %1005 = vmatpush1.msra.mxu0 %v725_v9  ;;  %855 = vst [vmem:[%s2454_s15 + $0x90] sm:$0xff] %v727_v54  ;;  %1076 = vmatpush1.msra.mxu1 %v727_v54  ;;  %v711_v31 = vmax.f32 %v583_v51, 0.0  ;;  %v474_v34 = vmul.f32 %v2382_v35, %v2469_v16 }
  0xc2   : > { %838 = vst [vmem:[%s2454_s15 + $0x8] sm:$0xff] %v710_v49  ;;  %840 = vst [vmem:[%s2454_s15 + $0x18] sm:$0xff] %v712_v59  ;;  %v476_v6 = vmul.f32 %v2384_v36, %v2469_v16  ;;  %v473_v58 = vmul.f32 %v2386_v37, %v2469_v16  ;;  %1006 = vmatprep.subr.mxu0 %v710_v49  ;;  %1077 = vmatprep.subr.mxu1 %v712_v59  ;;  %v796_v8 = vmax.f32 %v2650_v5, 0.0 }
  0xc3   : > { %837 = vst [vmem:[%s2454_s15] sm:$0xff] %v709_v12  ;;  %v665_v57 = vadd.f32 %v2500_v52, %v489_v24  ;;  %v667_v50 = vadd.f32 %v2500_v52, %v491_v33  ;;  %v475_v23 = vmul.f32 %v2388_v38, %v2469_v16  ;;  %1007 = vmatpush1.msra.mxu0 %v709_v12  ;;  %839 = vst [vmem:[%s2454_s15 + $0x10] sm:$0xff] %v711_v31 }
  0xc4   : > { %1078 = vmatpush1.msra.mxu1 %v711_v31  ;;  %v650_v9 = vadd.f32 %v2528_v10, %v474_v34  ;;  %v652_v13 = vadd.f32 %v2528_v10, %v476_v6  ;;  %v649_v49 = vadd.f32 %v2528_v10, %v473_v58  ;;  %2041 = vmatmul.mubr.msk.f32.vlgmr.msra.gmra.mxu0 %vm972_vm0, %v2659_v7 }
  0xc5   : > { %2042 = vmatmul.mubr.msk.f32.vlgmr.msra.gmra.mxu1 %vm972_vm0, %v2659_v7  ;;  %924 = vst [vmem:[%s2454_s15 + $0x2b8] sm:$0xff] %v796_v8  ;;  %v793_v54 = vmax.f32 %v665_v57, 0.0  ;;  %v795_v59 = vmax.f32 %v667_v50, 0.0  ;;  %v651_v51 = vadd.f32 %v2528_v10, %v475_v23  ;;  %v458_v12 = vmul.f32 %v2382_v35, %v2502_v53  ;;  %1134 = vmatprep.subr.mxu0 %v826_v14 }
  0xc6   : > { %1205 = vmatprep.subr.mxu1 %v828_v19  ;;  %v778_v5 = vmax.f32 %v650_v9, 0.0  ;;  %v780_v24 = vmax.f32 %v652_v13, 0.0  ;;  %v777_v33 = vmax.f32 %v649_v49, 0.0  ;;  %v460_v31 = vmul.f32 %v2384_v36, %v2502_v53  ;;  %1135 = vmatpush1.msra.mxu0 %v825_v20 }
  0xc7   : > { %1206 = vmatpush1.msra.mxu1 %v827_v21  ;;  %921 = vst [vmem:[%s2454_s15 + $0x2a0] sm:$0xff] %v793_v54  ;;  %923 = vst [vmem:[%s2454_s15 + $0x2b0] sm:$0xff] %v795_v59  ;;  %v779_v63 = vmax.f32 %v651_v51, 0.0  ;;  %v634_v0 = vadd.f32 %v2555_v55, %v458_v12  ;;  %v457_v14 = vmul.f32 %v2386_v37, %v2502_v53  ;;  %1136 = vmatprep.subr.mxu0 %v810_v26 }
  0xc8   : > { %v459_v19 = vmul.f32 %v2388_v38, %v2502_v53  ;;  %1207 = vmatprep.subr.mxu1 %v812_v60  ;;  %906 = vst [vmem:[%s2454_s15 + $0x228] sm:$0xff] %v778_v5  ;;  %908 = vst [vmem:[%s2454_s15 + $0x238] sm:$0xff] %v780_v24  ;;  %v636_v1 = vadd.f32 %v2555_v55, %v460_v31  ;;  %v442_v2 = vmul.f32 %v2382_v35, %v2530_v11 }
  0xc9   : > { %905 = vst [vmem:[%s2454_s15 + $0x220] sm:$0xff] %v777_v33  ;;  %v444_v20 = vmul.f32 %v2384_v36, %v2530_v11  ;;  %1137 = vmatpush1.msra.mxu0 %v809_v4  ;;  %v3371_v21 = vmax.f32 %v2597_v28, 0.0  ;;  %907 = vst [vmem:[%s2454_s15 + $0x230] sm:$0xff] %v779_v63  ;;  %v762_v17 = vmax.f32 %v634_v0, 0.0  ;;  %v633_v22 = vadd.f32 %v2555_v55, %v457_v14 }
  0xca   : > { %v635_v26 = vadd.f32 %v2555_v55, %v459_v19  ;;  %v441_v60 = vmul.f32 %v2386_v37, %v2530_v11  ;;  %1138 = vmatprep.subr.mxu0 %v794_v56  ;;  %v764_v3 = vmax.f32 %v636_v1, 0.0  ;;  %v618_v4 = vadd.f32 %v2586_v25, %v442_v2 }
  0xcb   : > { %1208 = vmatpush1.msra.mxu1 %v3371_v21  ;;  %v620_v28 = vadd.f32 %v2586_v25, %v444_v20  ;;  %v443_v34 = vmul.f32 %v2388_v38, %v2530_v11  ;;  %1139 = vmatpush1.msra.mxu0 %v793_v54  ;;  %890 = vst [vmem:[%s2454_s15 + $0x1a8] sm:$0xff] %v762_v17  ;;  %v761_v6 = vmax.f32 %v633_v22, 0.0 }
  0xcc   : > { %1209 = vmatprep.subr.mxu1 %v796_v8  ;;  %v763_v58 = vmax.f32 %v635_v26, 0.0  ;;  %v617_v32 = vadd.f32 %v2586_v25, %v441_v60  ;;  %v426_v56 = vmul.f32 %v2382_v35, %v2557_v29  ;;  %1140 = vmatprep.subr.mxu0 %v778_v5  ;;  %892 = vst [vmem:[%s2454_s15 + $0x1b8] sm:$0xff] %v764_v3  ;;  %v746_v8 = vmax.f32 %v618_v4, 0.0 }
  0xcd   : > { %1210 = vmatpush1.msra.mxu1 %v795_v59  ;;  %v748_v57 = vmax.f32 %v620_v28, 0.0  ;;  %v619_v50 = vadd.f32 %v2586_v25, %v443_v34  ;;  %v428_v23 = vmul.f32 %v2384_v36, %v2557_v29  ;;  %1141 = vmatpush1.msra.mxu0 %v777_v33  ;;  %889 = vst [vmem:[%s2454_s15 + $0x1a0] sm:$0xff] %v761_v6 }
  0xce   : > { %1211 = vmatprep.subr.mxu1 %v780_v24  ;;  %891 = vst [vmem:[%s2454_s15 + $0x1b0] sm:$0xff] %v763_v58  ;;  %v745_v9 = vmax.f32 %v617_v32, 0.0  ;;  %v602_v13 = vadd.f32 %v2616_v27, %v426_v56  ;;  %v425_v49 = vmul.f32 %v2386_v37, %v2557_v29  ;;  %v427_v54 = vmul.f32 %v2388_v38, %v2557_v29 }
  0xcf   : > { %1212 = vmatpush1.msra.mxu1 %v779_v63  ;;  %1142 = vmatprep.subr.mxu0 %v762_v17  ;;  %874 = vst [vmem:[%s2454_s15 + $0x128] sm:$0xff] %v746_v8  ;;  %876 = vst [vmem:[%s2454_s15 + $0x138] sm:$0xff] %v748_v57  ;;  %v747_v59 = vmax.f32 %v619_v50, 0.0  ;;  %v604_v51 = vadd.f32 %v2616_v27, %v428_v23  ;;  %v410_v12 = vmul.f32 %v2382_v35, %v2588_v30 }
  0xd0   : > { %1213 = vmatprep.subr.mxu1 %v764_v3  ;;  %v412_v5 = vmul.f32 %v2384_v36, %v2588_v30  ;;  %1143 = vmatpush1.msra.mxu0 %v761_v6  ;;  %873 = vst [vmem:[%s2454_s15 + $0x120] sm:$0xff] %v745_v9  ;;  %v730_v24 = vmax.f32 %v602_v13, 0.0  ;;  %v601_v33 = vadd.f32 %v2616_v27, %v425_v49 }
  0xd1   : > { %1214 = vmatpush1.msra.mxu1 %v763_v58  ;;  %v603_v31 = vadd.f32 %v2616_v27, %v427_v54  ;;  %v409_v63 = vmul.f32 %v2386_v37, %v2588_v30  ;;  %1144 = vmatprep.subr.mxu0 %v746_v8  ;;  %875 = vst [vmem:[%s2454_s15 + $0x130] sm:$0xff] %v747_v59  ;;  %v732_v35 = vmax.f32 %v604_v51, 0.0  ;;  %v3372_v58 = vmov 0.0  }
  0xd2   : > { %1215 = vmatprep.subr.mxu1 %v748_v57  ;;  %v586_v0 = vadd.f32 %v2618_v18, %v410_v12  ;;  %v588_v36 = vadd.f32 %v2618_v18, %v412_v5  ;;  %v411_v14 = vmul.f32 %v2388_v38, %v2588_v30  ;;  %1145 = vmatpush1.msra.mxu0 %v745_v9  ;;  %v729_v19 = vmax.f32 %v601_v33, 0.0 }
  0xd3   : > { %1216 = vmatpush1.msra.mxu1 %v747_v59  ;;  %858 = vst [vmem:[%s2454_s15 + $0xa8] sm:$0xff] %v730_v24  ;;  %v731_v1 = vmax.f32 %v603_v31, 0.0  ;;  %v585_v37 = vadd.f32 %v2618_v18, %v409_v63  ;;  %v526_v2 = vmul.f32 %v2394_v41, %v2400_v44  ;;  %1146 = vmatprep.subr.mxu0 %v730_v24  ;;  %860 = vst [vmem:[%s2454_s15 + $0xb8] sm:$0xff] %v732_v35 }
  0xd4   : > { %1217 = vmatprep.subr.mxu1 %v732_v35  ;;  %v714_v20 = vmax.f32 %v586_v0, 0.0  ;;  %v716_v21 = vmax.f32 %v588_v36, 0.0  ;;  %v587_v38 = vadd.f32 %v2618_v18, %v411_v14  ;;  %v528_v17 = vmul.f32 %v2396_v42, %v2400_v44  ;;  %857 = vst [vmem:[%s2454_s15 + $0xa0] sm:$0xff] %v729_v19  ;;  %1147 = vmatpush1.msra.mxu0 %v729_v19 }
  0xd5   : > { %859 = vst [vmem:[%s2454_s15 + $0xb0] sm:$0xff] %v731_v1  ;;  %1218 = vmatpush1.msra.mxu1 %v731_v1  ;;  %v713_v22 = vmax.f32 %v585_v37, 0.0  ;;  %v702_v26 = vadd.f32 %v2398_v43, %v526_v2  ;;  %v525_v60 = vmul.f32 %v2390_v39, %v2400_v44  ;;  %v527_v3 = vmul.f32 %v2392_v40, %v2400_v44 }
  0xd6   : > { %842 = vst [vmem:[%s2454_s15 + $0x28] sm:$0xff] %v714_v20  ;;  %1148 = vmatprep.subr.mxu0 %v714_v20  ;;  %844 = vst [vmem:[%s2454_s15 + $0x38] sm:$0xff] %v716_v21  ;;  %1219 = vmatprep.subr.mxu1 %v716_v21  ;;  %v715_v4 = vmax.f32 %v587_v38, 0.0  ;;  %v704_v28 = vadd.f32 %v2398_v43, %v528_v17  ;;  %v510_v34 = vmul.f32 %v2394_v41, %v2430_v61 }
  0xd7   : > { %v512_v6 = vmul.f32 %v2396_v42, %v2430_v61  ;;  %841 = vst [vmem:[%s2454_s15 + $0x20] sm:$0xff] %v713_v22  ;;  %1149 = vmatpush1.msra.mxu0 %v713_v22  ;;  %1182 = vmatprep.mubr.f32.mxu0 %v3372_v58  ;;  %v830_v32 = vmax.f32 %v702_v26, 0.0  ;;  %v701_v56 = vadd.f32 %v2398_v43, %v525_v60 }
  0xd8   : > { %v703_v8 = vadd.f32 %v2398_v43, %v527_v3  ;;  %v509_v57 = vmul.f32 %v2390_v39, %v2430_v61  ;;  %843 = vst [vmem:[%s2454_s15 + $0x30] sm:$0xff] %v715_v4  ;;  %1220 = vmatpush1.msra.mxu1 %v715_v4  ;;  %1253 = vmatprep.mubr.f32.mxu1 %v3372_v58  ;;  %v832_v50 = vmax.f32 %v704_v28, 0.0 }
  0xd9   : > { %v686_v23 = vadd.f32 %v2467_v15, %v510_v34  ;;  %v688_v9 = vadd.f32 %v2467_v15, %v512_v6  ;;  %v511_v13 = vmul.f32 %v2392_v40, %v2430_v61  ;;  %2043 = vmatmul.mubr.msk.f32.vlgmr.msra.gmra.mxu0 %vm972_vm0, %v2659_v7  ;;  %2044 = vmatmul.mubr.msk.f32.vlgmr.msra.gmra.mxu1 %vm972_vm0, %v2659_v7  ;;  %v829_v49 = vmax.f32 %v701_v56, 0.0 }
  0xda   : > { %958 = vst [vmem:[%s2454_s15 + $0x3c8] sm:$0xff] %v830_v32  ;;  %v831_v54 = vmax.f32 %v703_v8, 0.0  ;;  %v685_v59 = vadd.f32 %v2467_v15, %v509_v57  ;;  %v494_v51 = vmul.f32 %v2394_v41, %v2432_v62  ;;  %1276 = vmatprep.subr.mxu0 %v830_v32  ;;  %960 = vst [vmem:[%s2454_s15 + $0x3d8] sm:$0xff] %v832_v50  ;;  %1347 = vmatprep.subr.mxu1 %v832_v50 }
  0xdb   : > { %v814_v12 = vmax.f32 %v686_v23, 0.0  ;;  %v816_v5 = vmax.f32 %v688_v9, 0.0  ;;  %v687_v24 = vadd.f32 %v2467_v15, %v511_v13  ;;  %v496_v33 = vmul.f32 %v2396_v42, %v2432_v62  ;;  %957 = vst [vmem:[%s2454_s15 + $0x3c0] sm:$0xff] %v829_v49  ;;  %1277 = vmatpush1.msra.mxu0 %v829_v49  ;;  %1324 = vmatprep.mubr.f32.mxu0 %v3372_v58 }
  0xdc   : > { %959 = vst [vmem:[%s2454_s15 + $0x3d0] sm:$0xff] %v831_v54  ;;  %1348 = vmatpush1.msra.mxu1 %v831_v54  ;;  %v813_v31 = vmax.f32 %v685_v59, 0.0  ;;  %v670_v63 = vadd.f32 %v2500_v52, %v494_v51  ;;  %v493_v35 = vmul.f32 %v2390_v39, %v2432_v62  ;;  %v495_v0 = vmul.f32 %v2392_v40, %v2432_v62 }
  0xdd   : > { %942 = vst [vmem:[%s2454_s15 + $0x348] sm:$0xff] %v814_v12  ;;  %1278 = vmatprep.subr.mxu0 %v814_v12  ;;  %944 = vst [vmem:[%s2454_s15 + $0x358] sm:$0xff] %v816_v5  ;;  %1349 = vmatprep.subr.mxu1 %v816_v5  ;;  %v815_v36 = vmax.f32 %v687_v24, 0.0  ;;  %v672_v14 = vadd.f32 %v2500_v52, %v496_v33  ;;  %v478_v19 = vmul.f32 %v2394_v41, %v2469_v16 }
  0xde   : > { %v480_v1 = vmul.f32 %v2396_v42, %v2469_v16  ;;  %941 = vst [vmem:[%s2454_s15 + $0x340] sm:$0xff] %v813_v31  ;;  %1279 = vmatpush1.msra.mxu0 %v813_v31  ;;  %v798_v37 = vmax.f32 %v670_v63, 0.0  ;;  %v669_v2 = vadd.f32 %v2500_v52, %v493_v35  ;;  %v671_v20 = vadd.f32 %v2500_v52, %v495_v0 }
  0xdf   : > { %v477_v21 = vmul.f32 %v2390_v39, %v2469_v16  ;;  %943 = vst [vmem:[%s2454_s15 + $0x350] sm:$0xff] %v815_v36  ;;  %1350 = vmatpush1.msra.mxu1 %v815_v36  ;;  %v800_v38 = vmax.f32 %v672_v14, 0.0  ;;  %v654_v17 = vadd.f32 %v2528_v10, %v478_v19  ;;  %v479_v26 = vmul.f32 %v2392_v40, %v2469_v16 }
  0xe0   : > { %v656_v22 = vadd.f32 %v2528_v10, %v480_v1  ;;  %1395 = vmatprep.mubr.f32.mxu1 %v3372_v58  ;;  %926 = vst [vmem:[%s2454_s15 + $0x2c8] sm:$0xff] %v798_v37  ;;  %1280 = vmatprep.subr.mxu0 %v798_v37  ;;  %v797_v60 = vmax.f32 %v669_v2, 0.0  ;;  %v799_v3 = vmax.f32 %v671_v20, 0.0  ;;  %v462_v28 = vmul.f32 %v2394_v41, %v2502_v53 }
  0xe1   : > { %v653_v4 = vadd.f32 %v2528_v10, %v477_v21  ;;  %928 = vst [vmem:[%s2454_s15 + $0x2d8] sm:$0xff] %v800_v38  ;;  %1351 = vmatprep.subr.mxu1 %v800_v38  ;;  %v782_v34 = vmax.f32 %v654_v17, 0.0  ;;  %v655_v32 = vadd.f32 %v2528_v10, %v479_v26  ;;  %v464_v56 = vmul.f32 %v2396_v42, %v2502_v53 }
  0xe2   : > { %v784_v6 = vmax.f32 %v656_v22, 0.0  ;;  %925 = vst [vmem:[%s2454_s15 + $0x2c0] sm:$0xff] %v797_v60  ;;  %1281 = vmatpush1.msra.mxu0 %v797_v60  ;;  %927 = vst [vmem:[%s2454_s15 + $0x2d0] sm:$0xff] %v799_v3  ;;  %1352 = vmatpush1.msra.mxu1 %v799_v3  ;;  %v638_v57 = vadd.f32 %v2555_v55, %v462_v28  ;;  %v461_v50 = vmul.f32 %v2390_v39, %v2502_v53 }
  0xe3   : > { %v781_v8 = vmax.f32 %v653_v4, 0.0  ;;  %v463_v23 = vmul.f32 %v2392_v40, %v2502_v53  ;;  %910 = vst [vmem:[%s2454_s15 + $0x248] sm:$0xff] %v782_v34  ;;  %1282 = vmatprep.subr.mxu0 %v782_v34  ;;  %v783_v9 = vmax.f32 %v655_v32, 0.0  ;;  %v640_v13 = vadd.f32 %v2555_v55, %v464_v56 }
  0xe4   : > { %912 = vst [vmem:[%s2454_s15 + $0x258] sm:$0xff] %v784_v6  ;;  %1353 = vmatprep.subr.mxu1 %v784_v6  ;;  %v446_v49 = vmul.f32 %v2394_v41, %v2530_v11  ;;  %v448_v54 = vmul.f32 %v2396_v42, %v2530_v11  ;;  %v766_v59 = vmax.f32 %v638_v57, 0.0  ;;  %v637_v51 = vadd.f32 %v2555_v55, %v461_v50 }
  0xe5   : > { %909 = vst [vmem:[%s2454_s15 + $0x240] sm:$0xff] %v781_v8  ;;  %1283 = vmatpush1.msra.mxu0 %v781_v8  ;;  %v639_v12 = vadd.f32 %v2555_v55, %v463_v23  ;;  %v445_v5 = vmul.f32 %v2390_v39, %v2530_v11  ;;  %911 = vst [vmem:[%s2454_s15 + $0x250] sm:$0xff] %v783_v9  ;;  %1354 = vmatpush1.msra.mxu1 %v783_v9  ;;  %v768_v24 = vmax.f32 %v640_v13, 0.0 }
  0xe6   : > { %v622_v33 = vadd.f32 %v2586_v25, %v446_v49  ;;  %v624_v31 = vadd.f32 %v2586_v25, %v448_v54  ;;  %v447_v63 = vmul.f32 %v2392_v40, %v2530_v11  ;;  %894 = vst [vmem:[%s2454_s15 + $0x1c8] sm:$0xff] %v766_v59  ;;  %1284 = vmatprep.subr.mxu0 %v766_v59  ;;  %v765_v35 = vmax.f32 %v637_v51, 0.0 }
  0xe7   : > { %v767_v0 = vmax.f32 %v639_v12, 0.0  ;;  %v621_v36 = vadd.f32 %v2586_v25, %v445_v5  ;;  %v430_v14 = vmul.f32 %v2394_v41, %v2557_v29  ;;  %896 = vst [vmem:[%s2454_s15 + $0x1d8] sm:$0xff] %v768_v24  ;;  %1355 = vmatprep.subr.mxu1 %v768_v24  ;;  %v432_v2 = vmul.f32 %v2396_v42, %v2557_v29 }
  0xe8   : > { %v750_v19 = vmax.f32 %v622_v33, 0.0  ;;  %v752_v1 = vmax.f32 %v624_v31, 0.0  ;;  %v623_v37 = vadd.f32 %v2586_v25, %v447_v63  ;;  %893 = vst [vmem:[%s2454_s15 + $0x1c0] sm:$0xff] %v765_v35  ;;  %1285 = vmatpush1.msra.mxu0 %v765_v35  ;;  %v429_v38 = vmul.f32 %v2390_v39, %v2557_v29 }
  0xe9   : > { %895 = vst [vmem:[%s2454_s15 + $0x1d0] sm:$0xff] %v767_v0  ;;  %1356 = vmatpush1.msra.mxu1 %v767_v0  ;;  %v749_v20 = vmax.f32 %v621_v36, 0.0  ;;  %v606_v21 = vadd.f32 %v2616_v27, %v430_v14  ;;  %v431_v17 = vmul.f32 %v2392_v40, %v2557_v29  ;;  %v608_v26 = vadd.f32 %v2616_v27, %v432_v2 }
  0xea   : > { %878 = vst [vmem:[%s2454_s15 + $0x148] sm:$0xff] %v750_v19  ;;  %1286 = vmatprep.subr.mxu0 %v750_v19  ;;  %880 = vst [vmem:[%s2454_s15 + $0x158] sm:$0xff] %v752_v1  ;;  %1357 = vmatprep.subr.mxu1 %v752_v1  ;;  %v751_v22 = vmax.f32 %v623_v37, 0.0  ;;  %v414_v60 = vmul.f32 %v2394_v41, %v2588_v30  ;;  %v416_v3 = vmul.f32 %v2396_v42, %v2588_v30 }
  0xeb   : > { %877 = vst [vmem:[%s2454_s15 + $0x140] sm:$0xff] %v749_v20  ;;  %1287 = vmatpush1.msra.mxu0 %v749_v20  ;;  %v734_v4 = vmax.f32 %v606_v21, 0.0  ;;  %v605_v28 = vadd.f32 %v2616_v27, %v429_v38  ;;  %v607_v34 = vadd.f32 %v2616_v27, %v431_v17  ;;  %v413_v6 = vmul.f32 %v2390_v39, %v2588_v30 }
  0xec   : > { %879 = vst [vmem:[%s2454_s15 + $0x150] sm:$0xff] %v751_v22  ;;  %1358 = vmatpush1.msra.mxu1 %v751_v22  ;;  %v736_v32 = vmax.f32 %v608_v26, 0.0  ;;  %v590_v41 = vadd.f32 %v2618_v18, %v414_v60  ;;  %v592_v56 = vadd.f32 %v2618_v18, %v416_v3  ;;  %v415_v42 = vmul.f32 %v2392_v40, %v2588_v30 }
  0xed   : > { %862 = vst [vmem:[%s2454_s15 + $0xc8] sm:$0xff] %v734_v4  ;;  %1288 = vmatprep.subr.mxu0 %v734_v4  ;;  %v733_v8 = vmax.f32 %v605_v28, 0.0  ;;  %v735_v57 = vmax.f32 %v607_v34, 0.0  ;;  %v589_v50 = vadd.f32 %v2618_v18, %v413_v6  ;;  %v530_v39 = vmul.f32 %v2402_v45, %v2400_v44 }
  0xee   : > { %864 = vst [vmem:[%s2454_s15 + $0xd8] sm:$0xff] %v736_v32  ;;  %1359 = vmatprep.subr.mxu1 %v736_v32  ;;  %v718_v23 = vmax.f32 %v590_v41, 0.0  ;;  %v720_v9 = vmax.f32 %v592_v56, 0.0  ;;  %v591_v13 = vadd.f32 %v2618_v18, %v415_v42  ;;  %v532_v40 = vmul.f32 %v2404_v46, %v2400_v44 }
  0xef   : > { %861 = vst [vmem:[%s2454_s15 + $0xc0] sm:$0xff] %v733_v8  ;;  %1289 = vmatpush1.msra.mxu0 %v733_v8  ;;  %863 = vst [vmem:[%s2454_s15 + $0xd0] sm:$0xff] %v735_v57  ;;  %1360 = vmatpush1.msra.mxu1 %v735_v57  ;;  %v717_v49 = vmax.f32 %v589_v50, 0.0  ;;  %v706_v54 = vadd.f32 %v2398_v43, %v530_v39  ;;  %v529_v59 = vmul.f32 %v2406_v47, %v2400_v44 }
  0xf0   : > { %v531_v51 = vmul.f32 %v2408_v48, %v2400_v44  ;;  %846 = vst [vmem:[%s2454_s15 + $0x48] sm:$0xff] %v718_v23  ;;  %1290 = vmatprep.subr.mxu0 %v718_v23  ;;  %848 = vst [vmem:[%s2454_s15 + $0x58] sm:$0xff] %v720_v9  ;;  %1361 = vmatprep.subr.mxu1 %v720_v9  ;;  %v719_v12 = vmax.f32 %v591_v13, 0.0  ;;  %v708_v5 = vadd.f32 %v2398_v43, %v532_v40 }
  0xf1   : > { %v514_v24 = vmul.f32 %v2402_v45, %v2430_v61  ;;  %v516_v33 = vmul.f32 %v2404_v46, %v2430_v61  ;;  %845 = vst [vmem:[%s2454_s15 + $0x40] sm:$0xff] %v717_v49  ;;  %1291 = vmatpush1.msra.mxu0 %v717_v49  ;;  %v834_v31 = vmax.f32 %v706_v54, 0.0  ;;  %v705_v63 = vadd.f32 %v2398_v43, %v529_v59 }
  0xf2   : > { %v707_v44 = vadd.f32 %v2398_v43, %v531_v51  ;;  %v513_v35 = vmul.f32 %v2406_v47, %v2430_v61  ;;  %847 = vst [vmem:[%s2454_s15 + $0x50] sm:$0xff] %v719_v12  ;;  %1362 = vmatpush1.msra.mxu1 %v719_v12  ;;  %2045 = vmatmul.mubr.msk.f32.vlgmr.msra.gmra.mxu0 %vm972_vm0, %v2659_v7  ;;  %v836_v0 = vmax.f32 %v708_v5, 0.0 }
  0xf3   : > { %v690_v36 = vadd.f32 %v2467_v15, %v514_v24  ;;  %v692_v14 = vadd.f32 %v2467_v15, %v516_v33  ;;  %v515_v19 = vmul.f32 %v2408_v48, %v2430_v61  ;;  %2046 = vmatmul.mubr.msk.f32.vlgmr.msra.gmra.mxu1 %vm972_vm0, %v2659_v7  ;;  %962 = vst [vmem:[%s2454_s15 + $0x3e8] sm:$0xff] %v834_v31  ;;  %v833_v43 = vmax.f32 %v705_v63, 0.0 }
  0xf4   : > { %1418 = vmatprep.subr.mxu0 %v834_v31  ;;  %v835_v1 = vmax.f32 %v707_v44, 0.0  ;;  %v689_v37 = vadd.f32 %v2467_v15, %v513_v35  ;;  %v498_v2 = vmul.f32 %v2402_v45, %v2432_v62  ;;  %964 = vst [vmem:[%s2454_s15 + $0x3f8] sm:$0xff] %v836_v0  ;;  %1489 = vmatprep.subr.mxu1 %v836_v0 }
  0xf5   : > { %v818_v20 = vmax.f32 %v690_v36, 0.0  ;;  %v820_v21 = vmax.f32 %v692_v14, 0.0  ;;  %v691_v61 = vadd.f32 %v2467_v15, %v515_v19  ;;  %v500_v38 = vmul.f32 %v2404_v46, %v2432_v62  ;;  %1466 = vmatprep.mubr.f32.mxu0 %v3372_v58  ;;  %961 = vst [vmem:[%s2454_s15 + $0x3e0] sm:$0xff] %v833_v43  ;;  %1419 = vmatpush1.msra.mxu0 %v833_v43 }
  0xf6   : > { %963 = vst [vmem:[%s2454_s15 + $0x3f0] sm:$0xff] %v835_v1  ;;  %1490 = vmatpush1.msra.mxu1 %v835_v1  ;;  %v817_v17 = vmax.f32 %v689_v37, 0.0  ;;  %v674_v22 = vadd.f32 %v2500_v52, %v498_v2  ;;  %v497_v26 = vmul.f32 %v2406_v47, %v2432_v62  ;;  %v499_v60 = vmul.f32 %v2408_v48, %v2432_v62 }
  0xf7   : > { %946 = vst [vmem:[%s2454_s15 + $0x368] sm:$0xff] %v818_v20  ;;  %1420 = vmatprep.subr.mxu0 %v818_v20  ;;  %948 = vst [vmem:[%s2454_s15 + $0x378] sm:$0xff] %v820_v21  ;;  %1491 = vmatprep.subr.mxu1 %v820_v21  ;;  %v819_v15 = vmax.f32 %v691_v61, 0.0  ;;  %v676_v3 = vadd.f32 %v2500_v52, %v500_v38  ;;  %v482_v4 = vmul.f32 %v2402_v45, %v2469_v16 }
  0xf8   : > { %v484_v28 = vmul.f32 %v2404_v46, %v2469_v16  ;;  %945 = vst [vmem:[%s2454_s15 + $0x360] sm:$0xff] %v817_v17  ;;  %1421 = vmatpush1.msra.mxu0 %v817_v17  ;;  %v802_v34 = vmax.f32 %v674_v22, 0.0  ;;  %v673_v62 = vadd.f32 %v2500_v52, %v497_v26  ;;  %v675_v6 = vadd.f32 %v2500_v52, %v499_v60 }
  0xf9   : > { %v481_v32 = vmul.f32 %v2406_v47, %v2469_v16  ;;  %1537 = vmatprep.mubr.f32.mxu1 %v3372_v58  ;;  %947 = vst [vmem:[%s2454_s15 + $0x370] sm:$0xff] %v819_v15  ;;  %1492 = vmatpush1.msra.mxu1 %v819_v15  ;;  %v804_v41 = vmax.f32 %v676_v3, 0.0  ;;  %v658_v56 = vadd.f32 %v2528_v10, %v482_v4 }
  0xfa   : > { %v660_v42 = vadd.f32 %v2528_v10, %v484_v28  ;;  %v483_v8 = vmul.f32 %v2408_v48, %v2469_v16  ;;  %930 = vst [vmem:[%s2454_s15 + $0x2e8] sm:$0xff] %v802_v34  ;;  %1422 = vmatprep.subr.mxu0 %v802_v34  ;;  %v801_v52 = vmax.f32 %v673_v62, 0.0  ;;  %v803_v57 = vmax.f32 %v675_v6, 0.0 }
  0xfb   : > { %v657_v50 = vadd.f32 %v2528_v10, %v481_v32  ;;  %v466_v58 = vmul.f32 %v2402_v45, %v2502_v53  ;;  %932 = vst [vmem:[%s2454_s15 + $0x2f8] sm:$0xff] %v804_v41  ;;  %1493 = vmatprep.subr.mxu1 %v804_v41  ;;  %v786_v39 = vmax.f32 %v658_v56, 0.0  ;;  %v468_v16 = vmul.f32 %v2404_v46, %v2502_v53 }
  0xfc   : > { %v788_v23 = vmax.f32 %v660_v42, 0.0  ;;  %v659_v9 = vadd.f32 %v2528_v10, %v483_v8  ;;  %929 = vst [vmem:[%s2454_s15 + $0x2e0] sm:$0xff] %v801_v52  ;;  %1423 = vmatpush1.msra.mxu0 %v801_v52  ;;  %931 = vst [vmem:[%s2454_s15 + $0x2f0] sm:$0xff] %v803_v57  ;;  %1494 = vmatpush1.msra.mxu1 %v803_v57  ;;  %v465_v49 = vmul.f32 %v2406_v47, %v2502_v53 }
  0xfd   : > { %v785_v13 = vmax.f32 %v657_v50, 0.0  ;;  %v642_v40 = vadd.f32 %v2555_v55, %v466_v58  ;;  %v467_v54 = vmul.f32 %v2408_v48, %v2502_v53  ;;  %914 = vst [vmem:[%s2454_s15 + $0x268] sm:$0xff] %v786_v39  ;;  %1424 = vmatprep.subr.mxu0 %v786_v39  ;;  %v644_v59 = vadd.f32 %v2555_v55, %v468_v16 }
  0xfe   : > { %916 = vst [vmem:[%s2454_s15 + $0x278] sm:$0xff] %v788_v23  ;;  %1495 = vmatprep.subr.mxu1 %v788_v23  ;;  %v787_v10 = vmax.f32 %v659_v9, 0.0  ;;  %v450_v51 = vmul.f32 %v2402_v45, %v2530_v11  ;;  %v452_v12 = vmul.f32 %v2404_v46, %v2530_v11  ;;  %v641_v53 = vadd.f32 %v2555_v55, %v465_v49 }
  0xff   : > { %913 = vst [vmem:[%s2454_s15 + $0x260] sm:$0xff] %v785_v13  ;;  %1425 = vmatpush1.msra.mxu0 %v785_v13  ;;  %v770_v5 = vmax.f32 %v642_v40, 0.0  ;;  %v643_v24 = vadd.f32 %v2555_v55, %v467_v54  ;;  %v449_v33 = vmul.f32 %v2406_v47, %v2530_v11  ;;  %v772_v31 = vmax.f32 %v644_v59, 0.0 }
 0x100   : > { %915 = vst [vmem:[%s2454_s15 + $0x270] sm:$0xff] %v787_v10  ;;  %1496 = vmatpush1.msra.mxu1 %v787_v10  ;;  %v626_v63 = vadd.f32 %v2586_v25, %v450_v51  ;;  %v628_v44 = vadd.f32 %v2586_v25, %v452_v12  ;;  %v451_v35 = vmul.f32 %v2408_v48, %v2530_v11  ;;  %v769_v0 = vmax.f32 %v641_v53, 0.0 }
 0x101   : > { %898 = vst [vmem:[%s2454_s15 + $0x1e8] sm:$0xff] %v770_v5  ;;  %1426 = vmatprep.subr.mxu0 %v770_v5  ;;  %v771_v36 = vmax.f32 %v643_v24, 0.0  ;;  %v625_v55 = vadd.f32 %v2586_v25, %v449_v33  ;;  %v434_v14 = vmul.f32 %v2402_v45, %v2557_v29  ;;  %900 = vst [vmem:[%s2454_s15 + $0x1f8] sm:$0xff] %v772_v31  ;;  %1497 = vmatprep.subr.mxu1 %v772_v31 }
 0x102   : > { %v754_v19 = vmax.f32 %v626_v63, 0.0  ;;  %v756_v43 = vmax.f32 %v628_v44, 0.0  ;;  %v627_v1 = vadd.f32 %v2586_v25, %v451_v35  ;;  %v436_v11 = vmul.f32 %v2404_v46, %v2557_v29  ;;  %897 = vst [vmem:[%s2454_s15 + $0x1e0] sm:$0xff] %v769_v0  ;;  %1427 = vmatpush1.msra.mxu0 %v769_v0 }
 0x103   : > { %899 = vst [vmem:[%s2454_s15 + $0x1f0] sm:$0xff] %v771_v36  ;;  %1498 = vmatpush1.msra.mxu1 %v771_v36  ;;  %v753_v37 = vmax.f32 %v625_v55, 0.0  ;;  %v610_v2 = vadd.f32 %v2616_v27, %v434_v14  ;;  %v433_v20 = vmul.f32 %v2406_v47, %v2557_v29  ;;  %v435_v21 = vmul.f32 %v2408_v48, %v2557_v29 }
 0x104   : > { %882 = vst [vmem:[%s2454_s15 + $0x168] sm:$0xff] %v754_v19  ;;  %1428 = vmatprep.subr.mxu0 %v754_v19  ;;  %884 = vst [vmem:[%s2454_s15 + $0x178] sm:$0xff] %v756_v43  ;;  %1499 = vmatprep.subr.mxu1 %v756_v43  ;;  %v755_v25 = vmax.f32 %v627_v1, 0.0  ;;  %v612_v61 = vadd.f32 %v2616_v27, %v436_v11  ;;  %v418_v38 = vmul.f32 %v2402_v45, %v2588_v30 }
 0x105   : > { %v420_v17 = vmul.f32 %v2404_v46, %v2588_v30  ;;  %881 = vst [vmem:[%s2454_s15 + $0x160] sm:$0xff] %v753_v37  ;;  %1429 = vmatpush1.msra.mxu0 %v753_v37  ;;  %v738_v22 = vmax.f32 %v610_v2, 0.0  ;;  %v609_v29 = vadd.f32 %v2616_v27, %v433_v20  ;;  %v611_v26 = vadd.f32 %v2616_v27, %v435_v21 }
 0x106   : > { %v417_v60 = vmul.f32 %v2406_v47, %v2588_v30  ;;  %883 = vst [vmem:[%s2454_s15 + $0x170] sm:$0xff] %v755_v25  ;;  %1500 = vmatpush1.msra.mxu1 %v755_v25  ;;  %v740_v15 = vmax.f32 %v612_v61, 0.0  ;;  %v594_v45 = vadd.f32 %v2618_v18, %v418_v38  ;;  %v419_v3 = vmul.f32 %v2408_v48, %v2588_v30 }
 0x107   : > { %v596_v46 = vadd.f32 %v2618_v18, %v420_v17  ;;  %866 = vst [vmem:[%s2454_s15 + $0xe8] sm:$0xff] %v738_v22  ;;  %1430 = vmatprep.subr.mxu0 %v738_v22  ;;  %v737_v27 = vmax.f32 %v609_v29, 0.0  ;;  %v739_v4 = vmax.f32 %v611_v26, 0.0 }
 0x108   : > { %v593_v47 = vadd.f32 %v2618_v18, %v417_v60  ;;  %868 = vst [vmem:[%s2454_s15 + $0xf8] sm:$0xff] %v740_v15  ;;  %1501 = vmatprep.subr.mxu1 %v740_v15  ;;  %v722_v28 = vmax.f32 %v594_v45, 0.0  ;;  %v595_v62 = vadd.f32 %v2618_v18, %v419_v3  ;;  %v3045_v18 = vpop.permute.xlu0 %969 }
 0x109   : > { %v724_v34 = vmax.f32 %v596_v46, 0.0  ;;  %865 = vst [vmem:[%s2454_s15 + $0xe0] sm:$0xff] %v737_v27  ;;  %1431 = vmatpush1.msra.mxu0 %v737_v27  ;;  %867 = vst [vmem:[%s2454_s15 + $0xf0] sm:$0xff] %v739_v4  ;;  %1502 = vmatpush1.msra.mxu1 %v739_v4 }
 0x10a   : > { %v721_v48 = vmax.f32 %v593_v47, 0.0  ;;  %850 = vst [vmem:[%s2454_s15 + $0x68] sm:$0xff] %v722_v28  ;;  %1432 = vmatprep.subr.mxu0 %v722_v28  ;;  %v723_v30 = vmax.f32 %v595_v62, 0.0 }
 0x10b   : > { %852 = vst [vmem:[%s2454_s15 + $0x78] sm:$0xff] %v724_v34  ;;  %1503 = vmatprep.subr.mxu1 %v724_v34 }
 0x10c   : > { %849 = vst [vmem:[%s2454_s15 + $0x60] sm:$0xff] %v721_v48  ;;  %1433 = vmatpush1.msra.mxu0 %v721_v48  ;;  %851 = vst [vmem:[%s2454_s15 + $0x70] sm:$0xff] %v723_v30  ;;  %1504 = vmatpush1.msra.mxu1 %v723_v30 }
 0x10d   : > { %2047 = vmatmul.mubr.msk.f32.vlgmr.msra.gmra.mxu0 %vm972_vm0, %v2659_v7  ;;  %2048 = vmatmul.mubr.msk.f32.vlgmr.msra.gmra.mxu1 %vm972_vm0, %v2659_v7 }
 0x184   : > { %v1042_v6 = vpop.f32.mrf.mxu0 }
 0x185   : > { %v1113_v32 = vpop.f32.mrf.mxu1  ;;  %v1043_v41 = vadd.f32 %v1042_v6, %v3045_v18 }
 0x186   : > { %v1114_v56 = vadd.f32 %v1113_v32, %v3045_v18  ;;  %v1044_v42 = vpop.f32.mrf.mxu0 }
 0x187   : > { %v1115_v8 = vpop.f32.mrf.mxu1  ;;  %v2049_v52 = vmul.f32 -1.442695, %v1043_v41  ;;  %v1045_v50 = vadd.f32 %v1044_v42, %v3045_v18 }
 0x188   : > { %v2051_v57 = vmul.f32 -1.442695, %v1114_v56  ;;  %v1116_v58 = vadd.f32 %v1115_v8, %v3045_v18 }
 0x189   : > { %2110 = vpow2.f32 %v2049_v52  ;;  %v2050_v39 = vmul.f32 -1.442695, %v1045_v50 }
 0x18a   : > { %v2052_v23 = vmul.f32 -1.442695, %v1116_v58  ;;  %2112 = vpow2.f32 %v2051_v57 }
 0x18b   : > { %2114 = vpow2.f32 %v2050_v39 }
 0x18c   : > { %2116 = vpow2.f32 %v2052_v23 }
 0x196   : > { %v2111_v7 = vpop.eup %2110 }
 0x197   : > { %v2113_v13 = vpop.eup %2112  ;;  %v1592_v40 = vadd.f32 1.0, %v2111_v7 }
 0x198   : > { %v2115_v10 = vpop.eup %2114  ;;  %v1594_v59 = vadd.f32 1.0, %v2113_v13 }
 0x199   : > { %v1184_v9 = vpop.f32.mrf.mxu0  ;;  %v1255_v16 = vpop.f32.mrf.mxu1  ;;  %2118 = vrcp.f32 %v1592_v40  ;;  %v1593_v53 = vadd.f32 1.0, %v2115_v10 }
 0x19a   : > { %v1185_v49 = vadd.f32 %v1184_v9, %v3045_v18  ;;  %v1256_v54 = vadd.f32 %v1255_v16, %v3045_v18  ;;  %v2117_v5 = vpop.eup %2116  ;;  %2120 = vrcp.f32 %v1594_v59 }
 0x19b   : > { %v1186_v51 = vpop.f32.mrf.mxu0  ;;  %v1257_v12 = vpop.f32.mrf.mxu1  ;;  %v1595_v31 = vadd.f32 1.0, %v2117_v5  ;;  %2122 = vrcp.f32 %v1593_v53 }
 0x19c   : > { %v2053_v24 = vmul.f32 -1.442695, %v1185_v49  ;;  %v2055_v33 = vmul.f32 -1.442695, %v1256_v54  ;;  %v1187_v63 = vadd.f32 %v1186_v51, %v3045_v18  ;;  %v1258_v44 = vadd.f32 %v1257_v12, %v3045_v18 }
 0x19d   : > { %2124 = vrcp.f32 %v1595_v31 }
 0x19e   : > { %v2054_v35 = vmul.f32 -1.442695, %v1187_v63  ;;  %v2056_v0 = vmul.f32 -1.442695, %v1258_v44  ;;  %2126 = vpow2.f32 %v2053_v24 }
 0x19f   : > { %2128 = vpow2.f32 %v2055_v33 }
 0x1a0   : > { %2130 = vpow2.f32 %v2054_v35 }
 0x1a1   : > { %2132 = vpow2.f32 %v2056_v0 }
 0x1a6   : > { %v2119_v36 = vpop.eup %2118 }
 0x1a7   : > { %v2121_v55 = vpop.eup %2120  ;;  %1640 = vst [vmem:[%s3059_s19] sm:$0xff] %v2119_v36  ;;  %v1683_v36 = vld [vmem:[%s2454_s15] sm:$0xff] (%p2291_p4) }
 0x1a8   : > { %v2123_v14 = vpop.eup %2122  ;;  %1642 = vst [vmem:[%s3059_s19 + $0x10] sm:$0xff] %v2121_v55  ;;  %v1685_v55 = vld [vmem:[%s2454_s15 + $0x8] sm:$0xff] (%p2291_p4)  ;;  %1684 = vst [vmem:[%s3094_s27] sm:$0xff] (%p2291_p4), %v1683_v36  ;;  %v1811_v36 = vld [vmem:[%s2454_s15 + $0x200] sm:$0xff] (%p2291_p4) }
 0x1a9   : > { %1641 = vst [vmem:[%s3059_s19 + $0x8] sm:$0xff] %v2123_v14  ;;  %v1687_v14 = vld [vmem:[%s2454_s15 + $0x10] sm:$0xff] (%p2291_p4)  ;;  %1686 = vst [vmem:[%s3094_s27 + $0x8] sm:$0xff] (%p2291_p4), %v1685_v55  ;;  %v1813_v55 = vld [vmem:[%s2454_s15 + $0x208] sm:$0xff] (%p2291_p4) }
 0x1aa   : > { %v2125_v19 = vpop.eup %2124  ;;  %1688 = vst [vmem:[%s3094_s27 + $0x10] sm:$0xff] (%p2291_p4), %v1687_v14  ;;  %1812 = vst [vmem:[%s3094_s27 + $0x400] sm:$0xff] (%p2291_p4), %v1811_v36  ;;  %v1815_v14 = vld [vmem:[%s2454_s15 + $0x210] sm:$0xff] (%p2291_p4) }
 0x1ab   : > { %v2127_v43 = vpop.eup %2126  ;;  %1643 = vst [vmem:[%s3059_s19 + $0x18] sm:$0xff] %v2125_v19  ;;  %v1689_v19 = vld [vmem:[%s2454_s15 + $0x18] sm:$0xff] (%p2291_p4)  ;;  %1814 = vst [vmem:[%s3094_s27 + $0x408] sm:$0xff] (%p2291_p4), %v1813_v55 }
 0x1ac   : > { %v2129_v1 = vpop.eup %2128  ;;  %v1596_v11 = vadd.f32 1.0, %v2127_v43  ;;  %v1691_v43 = vld [vmem:[%s2454_s15 + $0x20] sm:$0xff] (%p2291_p4)  ;;  %1690 = vst [vmem:[%s3094_s27 + $0x18] sm:$0xff] (%p2291_p4), %v1689_v19  ;;  %v1817_v19 = vld [vmem:[%s2454_s15 + $0x218] sm:$0xff] (%p2291_p4)  ;;  %1816 = vst [vmem:[%s3094_s27 + $0x410] sm:$0xff] (%p2291_p4), %v1815_v14 }
 0x1ad   : > { %v2131_v37 = vpop.eup %2130  ;;  %v1598_v2 = vadd.f32 1.0, %v2129_v1  ;;  %v1693_v1 = vld [vmem:[%s2454_s15 + $0x28] sm:$0xff] (%p2291_p4)  ;;  %1692 = vst [vmem:[%s3094_s27 + $0x20] sm:$0xff] (%p2291_p4), %v1691_v43  ;;  %v1819_v43 = vld [vmem:[%s2454_s15 + $0x220] sm:$0xff] (%p2291_p4)  ;;  %1818 = vst [vmem:[%s3094_s27 + $0x418] sm:$0xff] (%p2291_p4), %v1817_v19 }
 0x1ae   : > { %v2133_v20 = vpop.eup %2132  ;;  %2134 = vrcp.f32 %v1596_v11  ;;  %v1597_v21 = vadd.f32 1.0, %v2131_v37  ;;  %1694 = vst [vmem:[%s3094_s27 + $0x28] sm:$0xff] (%p2291_p4), %v1693_v1  ;;  %v1695_v11 = vld [vmem:[%s2454_s15 + $0x30] sm:$0xff] (%p2291_p4)  ;;  %v1697_v37 = vld [vmem:[%s2454_s15 + $0x38] sm:$0xff] (%p2291_p4)  ;;  %1820 = vst [vmem:[%s3094_s27 + $0x420] sm:$0xff] (%p2291_p4), %v1819_v43 }
 0x1af   : > { %2136 = vrcp.f32 %v1598_v2  ;;  %v1599_v61 = vadd.f32 1.0, %v2133_v20  ;;  %v1699_v2 = vld [vmem:[%s2454_s15 + $0x40] sm:$0xff] (%p2291_p4)  ;;  %1696 = vst [vmem:[%s3094_s27 + $0x30] sm:$0xff] (%p2291_p4), %v1695_v11  ;;  %1698 = vst [vmem:[%s3094_s27 + $0x38] sm:$0xff] (%p2291_p4), %v1697_v37  ;;  %v1701_v20 = vld [vmem:[%s2454_s15 + $0x48] sm:$0xff] (%p2291_p4) }
 0x1b0   : > { %2138 = vrcp.f32 %v1597_v21  ;;  %1700 = vst [vmem:[%s3094_s27 + $0x40] sm:$0xff] (%p2291_p4), %v1699_v2  ;;  %v1703_v21 = vld [vmem:[%s2454_s15 + $0x50] sm:$0xff] (%p2291_p4)  ;;  %1702 = vst [vmem:[%s3094_s27 + $0x48] sm:$0xff] (%p2291_p4), %v1701_v20  ;;  %v1821_v1 = vld [vmem:[%s2454_s15 + $0x228] sm:$0xff] (%p2291_p4) }
 0x1b1   : > { %2140 = vrcp.f32 %v1599_v61  ;;  %1704 = vst [vmem:[%s3094_s27 + $0x50] sm:$0xff] (%p2291_p4), %v1703_v21  ;;  %v1707_v61 = vld [vmem:[%s2454_s15 + $0x60] sm:$0xff] (%p2291_p4)  ;;  %v1823_v11 = vld [vmem:[%s2454_s15 + $0x230] sm:$0xff] (%p2291_p4)  ;;  %v1825_v37 = vld [vmem:[%s2454_s15 + $0x238] sm:$0xff] (%p2291_p4) }
 0x1b2   : > { %v1326_v25 = vpop.f32.mrf.mxu0  ;;  %1708 = vst [vmem:[%s3094_s27 + $0x60] sm:$0xff] (%p2291_p4), %v1707_v61  ;;  %1822 = vst [vmem:[%s3094_s27 + $0x428] sm:$0xff] (%p2291_p4), %v1821_v1  ;;  %v1827_v2 = vld [vmem:[%s2454_s15 + $0x240] sm:$0xff] (%p2291_p4)  ;;  %v1829_v20 = vld [vmem:[%s2454_s15 + $0x248] sm:$0xff] (%p2291_p4) }
 0x1b3   : > { %v1327_v38 = vadd.f32 %v1326_v25, %v3045_v18  ;;  %v1397_v17 = vpop.f32.mrf.mxu1  ;;  %v1705_v25 = vld [vmem:[%s2454_s15 + $0x58] sm:$0xff] (%p2291_p4)  ;;  %1824 = vst [vmem:[%s3094_s27 + $0x430] sm:$0xff] (%p2291_p4), %v1823_v11  ;;  %1826 = vst [vmem:[%s3094_s27 + $0x438] sm:$0xff] (%p2291_p4), %v1825_v37  ;;  %v1831_v21 = vld [vmem:[%s2454_s15 + $0x250] sm:$0xff] (%p2291_p4) }
 0x1b4   : > { %v1398_v22 = vadd.f32 %v1397_v17, %v3045_v18  ;;  %v1328_v29 = vpop.f32.mrf.mxu0  ;;  %1706 = vst [vmem:[%s3094_s27 + $0x58] sm:$0xff] (%p2291_p4), %v1705_v25  ;;  %v1711_v17 = vld [vmem:[%s2454_s15 + $0x70] sm:$0xff] (%p2291_p4)  ;;  %1828 = vst [vmem:[%s3094_s27 + $0x440] sm:$0xff] (%p2291_p4), %v1827_v2  ;;  %v1833_v25 = vld [vmem:[%s2454_s15 + $0x258] sm:$0xff] (%p2291_p4) }
 0x1b5   : > { %v2057_v26 = vmul.f32 -1.442695, %v1327_v38  ;;  %v1329_v60 = vadd.f32 %v1328_v29, %v3045_v18  ;;  %v1399_v15 = vpop.f32.mrf.mxu1  ;;  %v1709_v38 = vld [vmem:[%s2454_s15 + $0x68] sm:$0xff] (%p2291_p4)  ;;  %1712 = vst [vmem:[%s3094_s27 + $0x70] sm:$0xff] (%p2291_p4), %v1711_v17  ;;  %v1715_v29 = vld [vmem:[%s2454_s15 + $0x80] sm:$0xff] (%p2291_p4)  ;;  %1830 = vst [vmem:[%s3094_s27 + $0x448] sm:$0xff] (%p2291_p4), %v1829_v20 }
 0x1b6   : > { %v2059_v45 = vmul.f32 -1.442695, %v1398_v22  ;;  %v1400_v46 = vadd.f32 %v1399_v15, %v3045_v18  ;;  %1710 = vst [vmem:[%s3094_s27 + $0x68] sm:$0xff] (%p2291_p4), %v1709_v38  ;;  %v1713_v22 = vld [vmem:[%s2454_s15 + $0x78] sm:$0xff] (%p2291_p4)  ;;  %1716 = vst [vmem:[%s3094_s27 + $0x100] sm:$0xff] (%p2291_p4), %v1715_v29  ;;  %v1835_v61 = vld [vmem:[%s2454_s15 + $0x260] sm:$0xff] (%p2291_p4) }
 0x1b7   : > { %2142 = vpow2.f32 %v2057_v26  ;;  %v2058_v3 = vmul.f32 -1.442695, %v1329_v60  ;;  %v1717_v26 = vld [vmem:[%s2454_s15 + $0x88] sm:$0xff] (%p2291_p4)  ;;  %1714 = vst [vmem:[%s3094_s27 + $0x78] sm:$0xff] (%p2291_p4), %v1713_v22  ;;  %v1719_v60 = vld [vmem:[%s2454_s15 + $0x90] sm:$0xff] (%p2291_p4)  ;;  %v1721_v15 = vld [vmem:[%s2454_s15 + $0x98] sm:$0xff] (%p2291_p4) }
 0x1b8   : > { %2144 = vpow2.f32 %v2059_v45  ;;  %v2060_v27 = vmul.f32 -1.442695, %v1400_v46  ;;  %1718 = vst [vmem:[%s3094_s27 + $0x108] sm:$0xff] (%p2291_p4), %v1717_v26  ;;  %v1723_v45 = vld [vmem:[%s2454_s15 + $0xa0] sm:$0xff] (%p2291_p4)  ;;  %1720 = vst [vmem:[%s3094_s27 + $0x110] sm:$0xff] (%p2291_p4), %v1719_v60  ;;  %v1725_v46 = vld [vmem:[%s2454_s15 + $0xa8] sm:$0xff] (%p2291_p4) }
 0x1b9   : > { %2146 = vpow2.f32 %v2058_v3  ;;  %1722 = vst [vmem:[%s3094_s27 + $0x118] sm:$0xff] (%p2291_p4), %v1721_v15  ;;  %1724 = vst [vmem:[%s3094_s27 + $0x120] sm:$0xff] (%p2291_p4), %v1723_v45  ;;  %v1727_v3 = vld [vmem:[%s2454_s15 + $0xb0] sm:$0xff] (%p2291_p4)  ;;  %v1837_v38 = vld [vmem:[%s2454_s15 + $0x268] sm:$0xff] (%p2291_p4) }
 0x1ba   : > { %2148 = vpow2.f32 %v2060_v27  ;;  %v1729_v27 = vld [vmem:[%s2454_s15 + $0xb8] sm:$0xff] (%p2291_p4)  ;;  %1726 = vst [vmem:[%s3094_s27 + $0x128] sm:$0xff] (%p2291_p4), %v1725_v46  ;;  %1728 = vst [vmem:[%s3094_s27 + $0x130] sm:$0xff] (%p2291_p4), %v1727_v3  ;;  %v1839_v17 = vld [vmem:[%s2454_s15 + $0x270] sm:$0xff] (%p2291_p4) }
 0x1bb   : > { %v2135_v4 = vpop.eup %2134  ;;  %1730 = vst [vmem:[%s3094_s27 + $0x138] sm:$0xff] (%p2291_p4), %v1729_v27  ;;  %1832 = vst [vmem:[%s3094_s27 + $0x450] sm:$0xff] (%p2291_p4), %v1831_v21  ;;  %v1841_v22 = vld [vmem:[%s2454_s15 + $0x278] sm:$0xff] (%p2291_p4)  ;;  %v1843_v29 = vld [vmem:[%s2454_s15 + $0x280] sm:$0xff] (%p2291_p4) }
 0x1bc   : > { %v2137_v47 = vpop.eup %2136  ;;  %1644 = vst [vmem:[%s3059_s19 + $0x20] sm:$0xff] %v2135_v4  ;;  %v1731_v4 = vld [vmem:[%s2454_s15 + $0xc0] sm:$0xff] (%p2291_p4)  ;;  %1834 = vst [vmem:[%s3094_s27 + $0x458] sm:$0xff] (%p2291_p4), %v1833_v25  ;;  %v1845_v26 = vld [vmem:[%s2454_s15 + $0x288] sm:$0xff] (%p2291_p4) }
 0x1bd   : > { %v2139_v28 = vpop.eup %2138  ;;  %1646 = vst [vmem:[%s3059_s19 + $0x30] sm:$0xff] %v2137_v47  ;;  %v1733_v47 = vld [vmem:[%s2454_s15 + $0xc8] sm:$0xff] (%p2291_p4)  ;;  %1732 = vst [vmem:[%s3094_s27 + $0x140] sm:$0xff] (%p2291_p4), %v1731_v4  ;;  %v1847_v60 = vld [vmem:[%s2454_s15 + $0x290] sm:$0xff] (%p2291_p4) }
 0x1be   : > { %v2141_v34 = vpop.eup %2140  ;;  %1645 = vst [vmem:[%s3059_s19 + $0x28] sm:$0xff] %v2139_v28  ;;  %v1735_v28 = vld [vmem:[%s2454_s15 + $0xd0] sm:$0xff] (%p2291_p4)  ;;  %1734 = vst [vmem:[%s3094_s27 + $0x148] sm:$0xff] (%p2291_p4), %v1733_v47  ;;  %v1849_v15 = vld [vmem:[%s2454_s15 + $0x298] sm:$0xff] (%p2291_p4) }
 0x1bf   : > { %1647 = vst [vmem:[%s3059_s19 + $0x38] sm:$0xff] %v2141_v34  ;;  %1736 = vst [vmem:[%s3094_s27 + $0x150] sm:$0xff] (%p2291_p4), %v1735_v28  ;;  %v1737_v34 = vld [vmem:[%s2454_s15 + $0xd8] sm:$0xff] (%p2291_p4)  ;;  %v1851_v45 = vld [vmem:[%s2454_s15 + $0x2a0] sm:$0xff] (%p2291_p4) }
 0x1c0   : > { %1738 = vst [vmem:[%s3094_s27 + $0x158] sm:$0xff] (%p2291_p4), %v1737_v34  ;;  %1836 = vst [vmem:[%s3094_s27 + $0x460] sm:$0xff] (%p2291_p4), %v1835_v61  ;;  %v1853_v46 = vld [vmem:[%s2454_s15 + $0x2a8] sm:$0xff] (%p2291_p4)  ;;  %v1855_v3 = vld [vmem:[%s2454_s15 + $0x2b0] sm:$0xff] (%p2291_p4) }
 0x1c1   : > { %1838 = vst [vmem:[%s3094_s27 + $0x468] sm:$0xff] (%p2291_p4), %v1837_v38  ;;  %1840 = vst [vmem:[%s3094_s27 + $0x470] sm:$0xff] (%p2291_p4), %v1839_v17  ;;  %v1857_v27 = vld [vmem:[%s2454_s15 + $0x2b8] sm:$0xff] (%p2291_p4)  ;;  %v1859_v4 = vld [vmem:[%s2454_s15 + $0x2c0] sm:$0xff] (%p2291_p4) }
 0x1c2   : > { %1842 = vst [vmem:[%s3094_s27 + $0x478] sm:$0xff] (%p2291_p4), %v1841_v22  ;;  %1844 = vst [vmem:[%s3094_s27 + $0x500] sm:$0xff] (%p2291_p4), %v1843_v29  ;;  %v1861_v47 = vld [vmem:[%s2454_s15 + $0x2c8] sm:$0xff] (%p2291_p4)  ;;  %v1863_v28 = vld [vmem:[%s2454_s15 + $0x2d0] sm:$0xff] (%p2291_p4) }
 0x1c3   : > { %1846 = vst [vmem:[%s3094_s27 + $0x508] sm:$0xff] (%p2291_p4), %v1845_v26  ;;  %1848 = vst [vmem:[%s3094_s27 + $0x510] sm:$0xff] (%p2291_p4), %v1847_v60  ;;  %v1865_v34 = vld [vmem:[%s2454_s15 + $0x2d8] sm:$0xff] (%p2291_p4) }
 0x1c4   : > { %v2143_v62 = vpop.eup %2142  ;;  %1850 = vst [vmem:[%s3094_s27 + $0x518] sm:$0xff] (%p2291_p4), %v1849_v15  ;;  %1852 = vst [vmem:[%s3094_s27 + $0x520] sm:$0xff] (%p2291_p4), %v1851_v45 }
 0x1c5   : > { %v2145_v48 = vpop.eup %2144  ;;  %v1600_v30 = vadd.f32 1.0, %v2143_v62  ;;  %v1739_v62 = vld [vmem:[%s2454_s15 + $0xe0] sm:$0xff] (%p2291_p4)  ;;  %1854 = vst [vmem:[%s3094_s27 + $0x528] sm:$0xff] (%p2291_p4), %v1853_v46  ;;  %1856 = vst [vmem:[%s3094_s27 + $0x530] sm:$0xff] (%p2291_p4), %v1855_v3 }
 0x1c6   : > { %v2147_v6 = vpop.eup %2146  ;;  %v1602_v32 = vadd.f32 1.0, %v2145_v48  ;;  %v1741_v48 = vld [vmem:[%s2454_s15 + $0xe8] sm:$0xff] (%p2291_p4)  ;;  %1740 = vst [vmem:[%s3094_s27 + $0x160] sm:$0xff] (%p2291_p4), %v1739_v62  ;;  %1858 = vst [vmem:[%s3094_s27 + $0x538] sm:$0xff] (%p2291_p4), %v1857_v27  ;;  %v1867_v62 = vld [vmem:[%s2454_s15 + $0x2e0] sm:$0xff] (%p2291_p4) }
 0x1c7   : > { %v2149_v41 = vpop.eup %2148  ;;  %2150 = vrcp.f32 %v1600_v30  ;;  %v1601_v56 = vadd.f32 1.0, %v2147_v6  ;;  %1742 = vst [vmem:[%s3094_s27 + $0x168] sm:$0xff] (%p2291_p4), %v1741_v48  ;;  %v1743_v30 = vld [vmem:[%s2454_s15 + $0xf0] sm:$0xff] (%p2291_p4)  ;;  %v1745_v6 = vld [vmem:[%s2454_s15 + $0xf8] sm:$0xff] (%p2291_p4)  ;;  %1860 = vst [vmem:[%s3094_s27 + $0x540] sm:$0xff] (%p2291_p4), %v1859_v4 }
 0x1c8   : > { %2152 = vrcp.f32 %v1602_v32  ;;  %v1603_v42 = vadd.f32 1.0, %v2149_v41  ;;  %v1747_v32 = vld [vmem:[%s2454_s15 + $0x100] sm:$0xff] (%p2291_p4)  ;;  %1744 = vst [vmem:[%s3094_s27 + $0x170] sm:$0xff] (%p2291_p4), %v1743_v30  ;;  %1746 = vst [vmem:[%s3094_s27 + $0x178] sm:$0xff] (%p2291_p4), %v1745_v6  ;;  %v1749_v41 = vld [vmem:[%s2454_s15 + $0x108] sm:$0xff] (%p2291_p4) }
 0x1c9   : > { %2154 = vrcp.f32 %v1601_v56  ;;  %1748 = vst [vmem:[%s3094_s27 + $0x200] sm:$0xff] (%p2291_p4), %v1747_v32  ;;  %v1751_v56 = vld [vmem:[%s2454_s15 + $0x110] sm:$0xff] (%p2291_p4)  ;;  %1750 = vst [vmem:[%s3094_s27 + $0x208] sm:$0xff] (%p2291_p4), %v1749_v41  ;;  %v1869_v48 = vld [vmem:[%s2454_s15 + $0x2e8] sm:$0xff] (%p2291_p4) }
 0x1ca   : > { %2156 = vrcp.f32 %v1603_v42  ;;  %v1753_v42 = vld [vmem:[%s2454_s15 + $0x118] sm:$0xff] (%p2291_p4)  ;;  %1752 = vst [vmem:[%s3094_s27 + $0x210] sm:$0xff] (%p2291_p4), %v1751_v56  ;;  %1862 = vst [vmem:[%s3094_s27 + $0x548] sm:$0xff] (%p2291_p4), %v1861_v47  ;;  %v1871_v30 = vld [vmem:[%s2454_s15 + $0x2f0] sm:$0xff] (%p2291_p4) }
 0x1cb   : > { %1754 = vst [vmem:[%s3094_s27 + $0x218] sm:$0xff] (%p2291_p4), %v1753_v42  ;;  %1864 = vst [vmem:[%s3094_s27 + $0x550] sm:$0xff] (%p2291_p4), %v1863_v28  ;;  %v1873_v6 = vld [vmem:[%s2454_s15 + $0x2f8] sm:$0xff] (%p2291_p4)  ;;  %v1875_v32 = vld [vmem:[%s2454_s15 + $0x300] sm:$0xff] (%p2291_p4) }
 0x1cc   : > { %1866 = vst [vmem:[%s3094_s27 + $0x558] sm:$0xff] (%p2291_p4), %v1865_v34  ;;  %1868 = vst [vmem:[%s3094_s27 + $0x560] sm:$0xff] (%p2291_p4), %v1867_v62  ;;  %v1877_v41 = vld [vmem:[%s2454_s15 + $0x308] sm:$0xff] (%p2291_p4)  ;;  %v1879_v56 = vld [vmem:[%s2454_s15 + $0x310] sm:$0xff] (%p2291_p4) }
 0x1cd   : > { %v1468_v8 = vpop.f32.mrf.mxu0  ;;  %v1539_v57 = vpop.f32.mrf.mxu1  ;;  %1870 = vst [vmem:[%s3094_s27 + $0x568] sm:$0xff] (%p2291_p4), %v1869_v48  ;;  %1872 = vst [vmem:[%s3094_s27 + $0x570] sm:$0xff] (%p2291_p4), %v1871_v30  ;;  %v1881_v42 = vld [vmem:[%s2454_s15 + $0x318] sm:$0xff] (%p2291_p4) }
 0x1ce   : > { %v1469_v52 = vadd.f32 %v1468_v8, %v3045_v18  ;;  %v1540_v50 = vadd.f32 %v1539_v57, %v3045_v18  ;;  %v1755_v8 = vld [vmem:[%s2454_s15 + $0x120] sm:$0xff] (%p2291_p4)  ;;  %v1759_v57 = vld [vmem:[%s2454_s15 + $0x130] sm:$0xff] (%p2291_p4)  ;;  %1874 = vst [vmem:[%s3094_s27 + $0x578] sm:$0xff] (%p2291_p4), %v1873_v6  ;;  %1876 = vst [vmem:[%s3094_s27 + $0x600] sm:$0xff] (%p2291_p4), %v1875_v32 }
 0x1cf   : > { %v1470_v58 = vpop.f32.mrf.mxu0  ;;  %v1541_v7 = vpop.f32.mrf.mxu1  ;;  %1756 = vst [vmem:[%s3094_s27 + $0x220] sm:$0xff] (%p2291_p4), %v1755_v8  ;;  %1760 = vst [vmem:[%s3094_s27 + $0x230] sm:$0xff] (%p2291_p4), %v1759_v57  ;;  %v1883_v8 = vld [vmem:[%s2454_s15 + $0x320] sm:$0xff] (%p2291_p4)  ;;  %v1887_v57 = vld [vmem:[%s2454_s15 + $0x330] sm:$0xff] (%p2291_p4) }
 0x1d0   : > { %v2061_v39 = vmul.f32 -1.442695, %v1469_v52  ;;  %v1471_v23 = vadd.f32 %v1470_v58, %v3045_v18  ;;  %v2063_v9 = vmul.f32 -1.442695, %v1540_v50  ;;  %v1542_v16 = vadd.f32 %v1541_v7, %v3045_v18  ;;  %v1757_v52 = vld [vmem:[%s2454_s15 + $0x128] sm:$0xff] (%p2291_p4)  ;;  %v1761_v50 = vld [vmem:[%s2454_s15 + $0x138] sm:$0xff] (%p2291_p4) }
 0x1d1   : > { %1758 = vst [vmem:[%s3094_s27 + $0x228] sm:$0xff] (%p2291_p4), %v1757_v52  ;;  %v1763_v58 = vld [vmem:[%s2454_s15 + $0x140] sm:$0xff] (%p2291_p4)  ;;  %1762 = vst [vmem:[%s3094_s27 + $0x238] sm:$0xff] (%p2291_p4), %v1761_v50  ;;  %v1769_v7 = vld [vmem:[%s2454_s15 + $0x158] sm:$0xff] (%p2291_p4) }
 0x1d2   : > { %2158 = vpow2.f32 %v2061_v39  ;;  %v2062_v13 = vmul.f32 -1.442695, %v1471_v23  ;;  %v2064_v40 = vmul.f32 -1.442695, %v1542_v16  ;;  %v1765_v39 = vld [vmem:[%s2454_s15 + $0x148] sm:$0xff] (%p2291_p4)  ;;  %1764 = vst [vmem:[%s3094_s27 + $0x240] sm:$0xff] (%p2291_p4), %v1763_v58 }
 0x1d3   : > { %2160 = vpow2.f32 %v2063_v9  ;;  %1766 = vst [vmem:[%s3094_s27 + $0x248] sm:$0xff] (%p2291_p4), %v1765_v39  ;;  %v1767_v23 = vld [vmem:[%s2454_s15 + $0x150] sm:$0xff] (%p2291_p4)  ;;  %v1771_v9 = vld [vmem:[%s2454_s15 + $0x160] sm:$0xff] (%p2291_p4)  ;;  %1770 = vst [vmem:[%s3094_s27 + $0x258] sm:$0xff] (%p2291_p4), %v1769_v7 }
 0x1d4   : > { %2162 = vpow2.f32 %v2062_v13  ;;  %v2151_v49 = vpop.eup %2150  ;;  %1768 = vst [vmem:[%s3094_s27 + $0x250] sm:$0xff] (%p2291_p4), %v1767_v23  ;;  %1772 = vst [vmem:[%s3094_s27 + $0x260] sm:$0xff] (%p2291_p4), %v1771_v9  ;;  %v1773_v16 = vld [vmem:[%s2454_s15 + $0x168] sm:$0xff] (%p2291_p4)  ;;  %v1775_v13 = vld [vmem:[%s2454_s15 + $0x170] sm:$0xff] (%p2291_p4) }
 0x1d5   : > { %2164 = vpow2.f32 %v2064_v40  ;;  %v2153_v54 = vpop.eup %2152  ;;  %1648 = vst [vmem:[%s3059_s19 + $0x40] sm:$0xff] %v2151_v49  ;;  %v1777_v40 = vld [vmem:[%s2454_s15 + $0x178] sm:$0xff] (%p2291_p4)  ;;  %1774 = vst [vmem:[%s3094_s27 + $0x268] sm:$0xff] (%p2291_p4), %v1773_v16  ;;  %v1779_v49 = vld [vmem:[%s2454_s15 + $0x180] sm:$0xff] (%p2291_p4) }
 0x1d6   : > { %v2155_v10 = vpop.eup %2154  ;;  %1650 = vst [vmem:[%s3059_s19 + $0x50] sm:$0xff] %v2153_v54  ;;  %1776 = vst [vmem:[%s3094_s27 + $0x270] sm:$0xff] (%p2291_p4), %v1775_v13  ;;  %v1781_v54 = vld [vmem:[%s2454_s15 + $0x188] sm:$0xff] (%p2291_p4)  ;;  %v1889_v50 = vld [vmem:[%s2454_s15 + $0x338] sm:$0xff] (%p2291_p4) }
 0x1d7   : > { %v2157_v59 = vpop.eup %2156  ;;  %1649 = vst [vmem:[%s3059_s19 + $0x48] sm:$0xff] %v2155_v10  ;;  %1778 = vst [vmem:[%s3094_s27 + $0x278] sm:$0xff] (%p2291_p4), %v1777_v40  ;;  %v1783_v10 = vld [vmem:[%s2454_s15 + $0x190] sm:$0xff] (%p2291_p4)  ;;  %v1885_v52 = vld [vmem:[%s2454_s15 + $0x328] sm:$0xff] (%p2291_p4) }
 0x1d8   : > { %1651 = vst [vmem:[%s3059_s19 + $0x58] sm:$0xff] %v2157_v59  ;;  %1780 = vst [vmem:[%s3094_s27 + $0x300] sm:$0xff] (%p2291_p4), %v1779_v49  ;;  %v1785_v59 = vld [vmem:[%s2454_s15 + $0x198] sm:$0xff] (%p2291_p4)  ;;  %v1891_v58 = vld [vmem:[%s2454_s15 + $0x340] sm:$0xff] (%p2291_p4) }
 0x1d9   : > { %1782 = vst [vmem:[%s3094_s27 + $0x308] sm:$0xff] (%p2291_p4), %v1781_v54  ;;  %1784 = vst [vmem:[%s3094_s27 + $0x310] sm:$0xff] (%p2291_p4), %v1783_v10  ;;  %v1893_v39 = vld [vmem:[%s2454_s15 + $0x348] sm:$0xff] (%p2291_p4)  ;;  %v1895_v23 = vld [vmem:[%s2454_s15 + $0x350] sm:$0xff] (%p2291_p4) }
 0x1da   : > { %1786 = vst [vmem:[%s3094_s27 + $0x318] sm:$0xff] (%p2291_p4), %v1785_v59  ;;  %1878 = vst [vmem:[%s3094_s27 + $0x608] sm:$0xff] (%p2291_p4), %v1877_v41  ;;  %v1897_v7 = vld [vmem:[%s2454_s15 + $0x358] sm:$0xff] (%p2291_p4)  ;;  %v1899_v9 = vld [vmem:[%s2454_s15 + $0x360] sm:$0xff] (%p2291_p4) }
 0x1db   : > { %1880 = vst [vmem:[%s3094_s27 + $0x610] sm:$0xff] (%p2291_p4), %v1879_v56  ;;  %1882 = vst [vmem:[%s3094_s27 + $0x618] sm:$0xff] (%p2291_p4), %v1881_v42  ;;  %v1901_v16 = vld [vmem:[%s2454_s15 + $0x368] sm:$0xff] (%p2291_p4)  ;;  %v1903_v13 = vld [vmem:[%s2454_s15 + $0x370] sm:$0xff] (%p2291_p4) }
 0x1dc   : > { %1884 = vst [vmem:[%s3094_s27 + $0x620] sm:$0xff] (%p2291_p4), %v1883_v8  ;;  %1886 = vst [vmem:[%s3094_s27 + $0x628] sm:$0xff] (%p2291_p4), %v1885_v52  ;;  %v1905_v40 = vld [vmem:[%s2454_s15 + $0x378] sm:$0xff] (%p2291_p4)  ;;  %v1907_v49 = vld [vmem:[%s2454_s15 + $0x380] sm:$0xff] (%p2291_p4) }
 0x1dd   : > { %1888 = vst [vmem:[%s3094_s27 + $0x630] sm:$0xff] (%p2291_p4), %v1887_v57  ;;  %1890 = vst [vmem:[%s3094_s27 + $0x638] sm:$0xff] (%p2291_p4), %v1889_v50  ;;  %v1909_v54 = vld [vmem:[%s2454_s15 + $0x388] sm:$0xff] (%p2291_p4)  ;;  %v1911_v10 = vld [vmem:[%s2454_s15 + $0x390] sm:$0xff] (%p2291_p4) }
 0x1de   : > { %1892 = vst [vmem:[%s3094_s27 + $0x640] sm:$0xff] (%p2291_p4), %v1891_v58  ;;  %1894 = vst [vmem:[%s3094_s27 + $0x648] sm:$0xff] (%p2291_p4), %v1893_v39  ;;  %v1913_v59 = vld [vmem:[%s2454_s15 + $0x398] sm:$0xff] (%p2291_p4) }
 0x1df   : > { %v2159_v51 = vpop.eup %2158  ;;  %1896 = vst [vmem:[%s3094_s27 + $0x650] sm:$0xff] (%p2291_p4), %v1895_v23  ;;  %1898 = vst [vmem:[%s3094_s27 + $0x658] sm:$0xff] (%p2291_p4), %v1897_v7 }
 0x1e0   : > { %v2161_v12 = vpop.eup %2160  ;;  %v1604_v5 = vadd.f32 1.0, %v2159_v51  ;;  %v1787_v51 = vld [vmem:[%s2454_s15 + $0x1a0] sm:$0xff] (%p2291_p4)  ;;  %1900 = vst [vmem:[%s3094_s27 + $0x660] sm:$0xff] (%p2291_p4), %v1899_v9  ;;  %1902 = vst [vmem:[%s3094_s27 + $0x668] sm:$0xff] (%p2291_p4), %v1901_v16 }
 0x1e1   : > { %v2163_v18 = vpop.eup %2162  ;;  %v1606_v53 = vadd.f32 1.0, %v2161_v12  ;;  %v1789_v12 = vld [vmem:[%s2454_s15 + $0x1a8] sm:$0xff] (%p2291_p4)  ;;  %1788 = vst [vmem:[%s3094_s27 + $0x320] sm:$0xff] (%p2291_p4), %v1787_v51  ;;  %1904 = vst [vmem:[%s3094_s27 + $0x670] sm:$0xff] (%p2291_p4), %v1903_v13  ;;  %v1915_v51 = vld [vmem:[%s2454_s15 + $0x3a0] sm:$0xff] (%p2291_p4) }
 0x1e2   : > { %v2165_v24 = vpop.eup %2164  ;;  %2166 = vrcp.f32 %v1604_v5  ;;  %v1605_v33 = vadd.f32 1.0, %v2163_v18  ;;  %1790 = vst [vmem:[%s3094_s27 + $0x328] sm:$0xff] (%p2291_p4), %v1789_v12  ;;  %v1791_v5 = vld [vmem:[%s2454_s15 + $0x1b0] sm:$0xff] (%p2291_p4)  ;;  %v1793_v18 = vld [vmem:[%s2454_s15 + $0x1b8] sm:$0xff] (%p2291_p4)  ;;  %1906 = vst [vmem:[%s3094_s27 + $0x678] sm:$0xff] (%p2291_p4), %v1905_v40 }
 0x1e3   : > { %2168 = vrcp.f32 %v1606_v53  ;;  %v1607_v31 = vadd.f32 1.0, %v2165_v24  ;;  %v1795_v53 = vld [vmem:[%s2454_s15 + $0x1c0] sm:$0xff] (%p2291_p4)  ;;  %1792 = vst [vmem:[%s3094_s27 + $0x330] sm:$0xff] (%p2291_p4), %v1791_v5  ;;  %1794 = vst [vmem:[%s3094_s27 + $0x338] sm:$0xff] (%p2291_p4), %v1793_v18  ;;  %v1797_v24 = vld [vmem:[%s2454_s15 + $0x1c8] sm:$0xff] (%p2291_p4) }
 0x1e4   : > { %2170 = vrcp.f32 %v1605_v33  ;;  %1796 = vst [vmem:[%s3094_s27 + $0x340] sm:$0xff] (%p2291_p4), %v1795_v53  ;;  %v1799_v33 = vld [vmem:[%s2454_s15 + $0x1d0] sm:$0xff] (%p2291_p4)  ;;  %1798 = vst [vmem:[%s3094_s27 + $0x348] sm:$0xff] (%p2291_p4), %v1797_v24  ;;  %v1917_v12 = vld [vmem:[%s2454_s15 + $0x3a8] sm:$0xff] (%p2291_p4) }
 0x1e5   : > { %2172 = vrcp.f32 %v1607_v31  ;;  %v1801_v31 = vld [vmem:[%s2454_s15 + $0x1d8] sm:$0xff] (%p2291_p4)  ;;  %1800 = vst [vmem:[%s3094_s27 + $0x350] sm:$0xff] (%p2291_p4), %v1799_v33  ;;  %1908 = vst [vmem:[%s3094_s27 + $0x700] sm:$0xff] (%p2291_p4), %v1907_v49  ;;  %v1919_v5 = vld [vmem:[%s2454_s15 + $0x3b0] sm:$0xff] (%p2291_p4) }
 0x1e6   : > { %1802 = vst [vmem:[%s3094_s27 + $0x358] sm:$0xff] (%p2291_p4), %v1801_v31  ;;  %1910 = vst [vmem:[%s3094_s27 + $0x708] sm:$0xff] (%p2291_p4), %v1909_v54  ;;  %v1921_v18 = vld [vmem:[%s2454_s15 + $0x3b8] sm:$0xff] (%p2291_p4)  ;;  %v1923_v53 = vld [vmem:[%s2454_s15 + $0x3c0] sm:$0xff] (%p2291_p4) }
 0x1e7   : > { %1912 = vst [vmem:[%s3094_s27 + $0x710] sm:$0xff] (%p2291_p4), %v1911_v10  ;;  %1914 = vst [vmem:[%s3094_s27 + $0x718] sm:$0xff] (%p2291_p4), %v1913_v59  ;;  %v1925_v24 = vld [vmem:[%s2454_s15 + $0x3c8] sm:$0xff] (%p2291_p4)  ;;  %v1927_v33 = vld [vmem:[%s2454_s15 + $0x3d0] sm:$0xff] (%p2291_p4) }
 0x1e8   : > { %1916 = vst [vmem:[%s3094_s27 + $0x720] sm:$0xff] (%p2291_p4), %v1915_v51  ;;  %1918 = vst [vmem:[%s3094_s27 + $0x728] sm:$0xff] (%p2291_p4), %v1917_v12  ;;  %v1929_v31 = vld [vmem:[%s2454_s15 + $0x3d8] sm:$0xff] (%p2291_p4) }
 0x1e9   : > { %1920 = vst [vmem:[%s3094_s27 + $0x730] sm:$0xff] (%p2291_p4), %v1919_v5  ;;  %1922 = vst [vmem:[%s3094_s27 + $0x738] sm:$0xff] (%p2291_p4), %v1921_v18 }
 0x1ea   : > { %1924 = vst [vmem:[%s3094_s27 + $0x740] sm:$0xff] (%p2291_p4), %v1923_v53  ;;  %1926 = vst [vmem:[%s3094_s27 + $0x748] sm:$0xff] (%p2291_p4), %v1925_v24 }
 0x1eb   : > { %1928 = vst [vmem:[%s3094_s27 + $0x750] sm:$0xff] (%p2291_p4), %v1927_v33  ;;  %1930 = vst [vmem:[%s3094_s27 + $0x758] sm:$0xff] (%p2291_p4), %v1929_v31 }
 0x1ef   : > { %v2167_v63 = vpop.eup %2166  ;;  %1667 = sbr.rel (!%p2291_p4) target bundleno = 503 (0x1f7), region = 48 }
 0x1f0   : > { %v2169_v44 = vpop.eup %2168  ;;  %1652 = vst [vmem:[%s3059_s19 + $0x60] sm:$0xff] %v2167_v63  ;;  %v1803_v63 = vld [vmem:[%s2454_s15 + $0x1e0] sm:$0xff] (%p2291_p4) }
 0x1f1   : > { %v2171_v35 = vpop.eup %2170  ;;  %1654 = vst [vmem:[%s3059_s19 + $0x70] sm:$0xff] %v2169_v44  ;;  %v1805_v44 = vld [vmem:[%s2454_s15 + $0x1e8] sm:$0xff] (%p2291_p4)  ;;  %1804 = vst [vmem:[%s3094_s27 + $0x360] sm:$0xff] (%p2291_p4), %v1803_v63  ;;  %v1931_v63 = vld [vmem:[%s2454_s15 + $0x3e0] sm:$0xff] (%p2291_p4) }
 0x1f2   : > { %v2173_v0 = vpop.eup %2172  ;;  %1653 = vst [vmem:[%s3059_s19 + $0x68] sm:$0xff] %v2171_v35  ;;  %v1807_v35 = vld [vmem:[%s2454_s15 + $0x1f0] sm:$0xff] (%p2291_p4)  ;;  %1806 = vst [vmem:[%s3094_s27 + $0x368] sm:$0xff] (%p2291_p4), %v1805_v44  ;;  %v1933_v44 = vld [vmem:[%s2454_s15 + $0x3e8] sm:$0xff] (%p2291_p4) }
 0x1f3   : > { %1655 = vst [vmem:[%s3059_s19 + $0x78] sm:$0xff] %v2173_v0  ;;  %1808 = vst [vmem:[%s3094_s27 + $0x370] sm:$0xff] (%p2291_p4), %v1807_v35  ;;  %v1809_v0 = vld [vmem:[%s2454_s15 + $0x1f8] sm:$0xff] (%p2291_p4)  ;;  %v1935_v35 = vld [vmem:[%s2454_s15 + $0x3f0] sm:$0xff] (%p2291_p4) }
 0x1f4   : > { %1810 = vst [vmem:[%s3094_s27 + $0x378] sm:$0xff] %v1809_v0  ;;  %1932 = vst [vmem:[%s3094_s27 + $0x760] sm:$0xff] %v1931_v63  ;;  %v1937_v0 = vld [vmem:[%s2454_s15 + $0x3f8] sm:$0xff] }
 0x1f5   : > { %1934 = vst [vmem:[%s3094_s27 + $0x768] sm:$0xff] %v1933_v44  ;;  %1936 = vst [vmem:[%s3094_s27 + $0x770] sm:$0xff] %v1935_v35 }
 0x1f6   : > { %1938 = vst [vmem:[%s3094_s27 + $0x778] sm:$0xff] %v1937_v0 }
 0x1f7 PF: > { %p15_p4 = scmp.ge.s32.totalorder %s2281_s25, 4   ;;  %s3373_s21 = smov %s2222_s22 }
 0x1f8   : > { %s3374_s22 = smov %s2289_s28  ;;  %s3375_s23 = smov %s2281_s25 }
 0x1f9   :  { %17 = sbr.rel (!%p15_p4) target bundleno = 2 (0x2), region = 110 }
 0x1fe   :  { %1966 = vsyncpa [#allocation3], 1 }
 0x1ff   :  { %1968 = vsyncpa [#allocation3 + $0x1], 1 }

</bundles_post_ra>
